<compile_context>
chip_gen: v7x
topology: tpu7x:2x2x1
jax: 0.10.0
libtpu: 0.0.40
codegen_flags: <defaults>
</compile_context>

<pallas_src>
import functools

import jax
import jax.numpy as jnp
from jax import lax
from jax.experimental import pallas as pl
from jax.experimental.pallas import tpu as pltpu


# --------------------------------------------------------------------------- #
# Pallas kernels
# --------------------------------------------------------------------------- #
def _global_network_kernel(xpt_ref, w1t_ref, b1_ref, w2_ref, b2_ref,
                           salb_ref, sals_ref, gvec_ref, *, vpu_saliency):
    """Feature-major global network, one (batch, token-tile) grid point.

    xpt : (1, pd, TM)   bf16  patch pixels (tokens on the TPU lane axis)
    w1t : (Cg, pd)      bf16  patch-embed weight (transposed)
    b1  : (Cg, 1)       f32
    w2  : (Cg, ncls) f32 [VPU path]  or  (ncls, Cg) f32 [MXU path]
    b2  : (ncls, 1)     f32
    salb/sals : (1, ncls, TM) bf16  lane-dense saliency logits / sigmoid
    gvec: (1, Cg, 1)    f32   running max over token tiles (accumulator)
    """
    t = pl.program_id(1)
    xpt = xpt_ref[0]                                             # (pd, TM)
    h = jnp.dot(w1t_ref[...], xpt, preferred_element_type=jnp.float32)
    h = jnp.maximum(h + b1_ref[...], 0.0)                        # (Cg, TM) ReLU

    if vpu_saliency:
        # ncls is tiny: a (ncls x Cg)@(Cg x TM) matmul wastes the MXU and
        # serializes behind the first matmul; do it as broadcast multiply +
        # cross-sublane reduce (otherwise-idle VPU/XLU slots).
        ncls = w2_ref.shape[1]
        cols = [jnp.sum(w2_ref[:, c:c + 1] * h, axis=0, keepdims=True)
                for c in range(ncls)]
        s = (cols[0] if ncls == 1 else jnp.concatenate(cols, axis=0))
        s = s + b2_ref[...]                                      # (ncls, TM)
    else:
        s = jnp.dot(w2_ref[...], h,
                    preferred_element_type=jnp.float32) + b2_ref[...]

    salb_ref[0] = s.astype(salb_ref.dtype)                       # bf16 writeback
    sals_ref[0] = jax.nn.sigmoid(s).astype(sals_ref.dtype)       # bf16 writeback

    tile_max = jnp.max(h, axis=1, keepdims=True)                 # (Cg, 1)

    @pl.when(t == 0)
    def _init():
        gvec_ref[0] = tile_max

    @pl.when(t > 0)
    def _acc():
        gvec_ref[0] = jnp.maximum(gvec_ref[0], tile_max)


def _local_attention_kernel(cp_ref, wl_ref, bl_ref, uv_ref, wr_ref,
                            hcr_ref, z_ref, a_ref, *, k, p_tok, d):
    """Fused LocalNetwork + gated-attention MIL for one image (grid=(N,)).

    cp : (1, K*P, pd) bf16   crop patches (crop-major, token-minor)
    wl : (pd, L) bf16        bl : (1, L) f32
    uv : (L, 2D) f32         [attn_u | attn_v] concatenated
    wr : (1, D)  f32         attention weight row
    hcr: (1, K, L)  z: (1, 1, L)  a: (1, K, 1)   all f32
    """
    h = jnp.dot(cp_ref[0], wl_ref[...],
                preferred_element_type=jnp.float32)              # (K*P, L) one flat matmul
    h = jnp.maximum(h + bl_ref[...], 0.0)
    hc = jnp.max(h.reshape(k, p_tok, h.shape[-1]), axis=1)       # (K, L) per-crop max pool
    hcr_ref[0] = hc

    puv = jnp.dot(hc, uv_ref[...], preferred_element_type=jnp.float32)  # (K, 2D)
    gate = jax.nn.sigmoid(puv[:, :d]) * jnp.tanh(puv[:, d:])     # (K, D)
    # width-1 attention matmul -> broadcast multiply + lane reduce (no MXU)
    score = jnp.sum(gate * wr_ref[...], axis=1, keepdims=True)   # (K, 1)
    # per-image softmax over K crops: per-image max + exact divide (stable)
    score = score - jnp.max(score, axis=0, keepdims=True)
    e = jnp.exp(score)
    attn = e / jnp.sum(e, axis=0, keepdims=True)                 # (K, 1)
    a_ref[0] = attn
    z_ref[0] = jnp.sum(attn * hc, axis=0, keepdims=True)         # (1, L)


# --------------------------------------------------------------------------- #
# Pallas call wrappers
# --------------------------------------------------------------------------- #
def _vmem_budget_bytes():
    """Per-chip-generation double-buffered working-set budget for the global kernel."""
    cap = 128 * 1024 * 1024
    try:
        cap = int(pltpu.get_tpu_info().vmem_capacity_bytes)
    except Exception:
        pass
    if cap <= 64 * 1024 * 1024:
        return 24 * 1024 * 1024      # v7x-class: only 64 MiB physical VMEM
    return 64 * 1024 * 1024          # v5e / v6e: 128 MiB physical VMEM


def _pick_token_tile(hw, pd, ncls, budget):
    """Largest lane-dense token tile whose double-buffered working set fits `budget`."""
    def working_set(tm):
        # 2x for double buffering: bf16 input block + two bf16 saliency output blocks
        return 2 * (pd * tm * 2 + 2 * ncls * tm * 2)

    if hw % 128 != 0:
        return hw                    # block == full dim is the only legal choice
    if working_set(hw) <= budget:
        return hw                    # whole token axis: one grid step per image
    best = 128
    for tm in range(128, hw, 128):
        if hw % tm == 0 and working_set(tm) <= budget:
            best = tm
    return best


def _global_network(x_patches_t, w1t, b1, w2, b2, tm, vpu_saliency,
                    vmem_limit_bytes):
    n, pd, hw = x_patches_t.shape
    cg = w1t.shape[0]
    ncls = b2.shape[0]
    n_tiles = hw // tm
    kernel = functools.partial(_global_network_kernel, vpu_saliency=vpu_saliency)
    return pl.pallas_call(
        kernel,
        out_shape=(
            jax.ShapeDtypeStruct((n, ncls, hw), jnp.bfloat16),   # logits (bf16 writeback)
            jax.ShapeDtypeStruct((n, ncls, hw), jnp.bfloat16),   # sigmoid (bf16 writeback)
            jax.ShapeDtypeStruct((n, cg, 1), jnp.float32),       # global max-pool
        ),
        grid=(n, n_tiles),
        in_specs=[
            pl.BlockSpec((1, pd, tm), lambda i, t: (i, 0, t)),
            pl.BlockSpec((cg, pd), lambda i, t: (0, 0)),
            pl.BlockSpec((cg, 1), lambda i, t: (0, 0)),
            pl.BlockSpec(w2.shape, lambda i, t: (0, 0)),
            pl.BlockSpec((ncls, 1), lambda i, t: (0, 0)),
        ],
        out_specs=(
            pl.BlockSpec((1, ncls, tm), lambda i, t: (i, 0, t)),
            pl.BlockSpec((1, ncls, tm), lambda i, t: (i, 0, t)),
            pl.BlockSpec((1, cg, 1), lambda i, t: (i, 0, 0)),
        ),
        compiler_params=pltpu.CompilerParams(
            dimension_semantics=("parallel", "arbitrary"),
            vmem_limit_bytes=vmem_limit_bytes),
    )(x_patches_t, w1t, b1, w2, b2)


def _local_attention(crop_patches, wl, bl, uv, w_row, n, k, p_tok, d):
    _, kp, pd = crop_patches.shape
    big_l = wl.shape[1]
    kernel = functools.partial(_local_attention_kernel, k=k, p_tok=p_tok, d=d)
    return pl.pallas_call(
        kernel,
        out_shape=(
            jax.ShapeDtypeStruct((n, k, big_l), jnp.float32),    # h_crops
            jax.ShapeDtypeStruct((n, 1, big_l), jnp.float32),    # z
            jax.ShapeDtypeStruct((n, k, 1), jnp.float32),        # attention
        ),
        grid=(n,),
        in_specs=[
            pl.BlockSpec((1, kp, pd), lambda i: (i, 0, 0)),
            pl.BlockSpec((pd, big_l), lambda i: (0, 0)),
            pl.BlockSpec((1, big_l), lambda i: (0, 0)),
            pl.BlockSpec((big_l, 2 * d), lambda i: (0, 0)),
            pl.BlockSpec((1, d), lambda i: (0, 0)),
        ],
        out_specs=(
            pl.BlockSpec((1, k, big_l), lambda i: (i, 0, 0)),
            pl.BlockSpec((1, 1, big_l), lambda i: (i, 0, 0)),
            pl.BlockSpec((1, k, 1), lambda i: (i, 0, 0)),
        ),
        compiler_params=pltpu.CompilerParams(
            dimension_semantics=("parallel",)),
    )(crop_patches, wl, bl, uv, w_row)


# --------------------------------------------------------------------------- #
# Plain-JAX glue (data-dependent / sorting pieces)
# --------------------------------------------------------------------------- #
def _patchify_token_major(x, p):
    # x: (B, H, W) -> (B, (H//p)*(W//p), p*p)
    b, hh, ww = x.shape
    x = x.reshape(b, hh // p, p, ww // p, p)
    return x.transpose(0, 1, 3, 2, 4).reshape(b, (hh // p) * (ww // p), p * p)


def _patchify_feature_major(x, p):
    # x: (B, H, W) -> (B, p*p, (H//p)*(W//p))  (tokens land on the lane axis)
    # TODO(synk): could be folded into the global kernel's BlockSpec (read raw
    # patch-rows and reshuffle in-kernel) to save one image-sized HBM round trip.
    b, hh, ww = x.shape
    x = x.reshape(b, hh // p, p, ww // p, p)
    return x.transpose(0, 2, 4, 1, 3).reshape(b, p * p, (hh // p) * (ww // p))


def _top_t_percent_aggregation(sal_sigmoid_flat, sal_logits_flat, percent_t):
    # TODO(synk): top-k sort has no clean Pallas TPU equivalent; done with lax.top_k.
    _, _, hw = sal_sigmoid_flat.shape
    top_t = max(1, int(round(hw * percent_t)))
    logits = sal_logits_flat.astype(jnp.float32)
    sig = sal_sigmoid_flat.astype(jnp.float32)
    topt_feature = jnp.mean(lax.top_k(logits, top_t)[0], axis=-1)            # (N, C)
    y_global = jnp.mean(lax.top_k(sig, top_t)[0], axis=-1)                   # (N, C)
    return topt_feature, y_global


def _retrieve_roi_positions(saliency_map, crop_shape, big_h, big_w, num_crops):
    # TODO(synk): greedy data-dependent window-argmax selection stays in XLA.
    n, c, h, w = saliency_map.shape
    ch = max(1, int(round(crop_shape[0] * h / big_h)))
    cw = max(1, int(round(crop_shape[1] * w / big_w)))
    flat = saliency_map.reshape(n, c, -1)
    max_v = jnp.max(flat, axis=2).reshape(n, c, 1, 1)
    min_v = jnp.min(flat, axis=2).reshape(n, c, 1, 1)
    norm = (saliency_map - min_v) / (max_v - min_v + 1e-8)
    current = jnp.sum(norm, axis=1)                              # (N, h, w)

    yy = jnp.arange(h)[None, :, None]
    xx = jnp.arange(w)[None, None, :]
    positions = []
    for _ in range(num_crops):
        pooled = lax.reduce_window(current, 0.0, lax.add,
                                   (1, ch, cw), (1, 1, 1), 'VALID') / (ch * cw)
        pw = pooled.shape[2]
        idx = jnp.argmax(pooled.reshape(n, -1), axis=1)
        py = (idx // pw).astype(jnp.int32)
        px = (idx % pw).astype(jnp.int32)
        positions.append(jnp.stack([py, px], axis=1))            # (N, 2)
        mask = ((yy >= py[:, None, None]) & (yy < py[:, None, None] + ch) &
                (xx >= px[:, None, None]) & (xx < px[:, None, None] + cw))
        current = jnp.where(mask, 0.0, current)
    return jnp.stack(positions, axis=1)                          # (N, K, 2)


def _convert_crop_position(crops_small, cam_size, big_h, big_w, crop_shape):
    h, w = cam_size
    ch, cw = crop_shape
    iy = jnp.round(crops_small[..., 0].astype(jnp.float32) / h * big_h)
    ix = jnp.round(crops_small[..., 1].astype(jnp.float32) / w * big_w)
    # Clamp so the reported locations always match the actually-extracted crops.
    iy = jnp.clip(iy, 0, big_h - ch).astype(jnp.int32)
    ix = jnp.clip(ix, 0, big_w - cw).astype(jnp.int32)
    return jnp.stack([iy, ix], axis=-1)                          # (N, K, 2)


def _retrieve_crops(x_original, crop_positions, crop_shape):
    # TODO(synk): a PrefetchScalarGridSpec DMA-gather kernel would be the fully
    # Pallas version; vmapped dynamic_slice handles the data-dependent gather.
    ch, cw = crop_shape
    img = x_original[:, 0]                                       # (N, H, W)

    def one(image, pos):
        return lax.dynamic_slice(image, (pos[0], pos[1]), (ch, cw))

    return jax.vmap(
        lambda image, ps: jax.vmap(functools.partial(one, image))(ps)
    )(img, crop_positions)                                       # (N, K, ch, cw)


# --------------------------------------------------------------------------- #
# GMIC (MIL learning type, simplified synthetic global/local backbones)
# --------------------------------------------------------------------------- #
class GMICPallas:
    def __init__(self, parameters):
        self.p = parameters
        key = jax.random.PRNGKey(42)
        ks = jax.random.split(key, 6)
        pd_g = parameters['global_patch'] ** 2
        pd_l = parameters['local_patch'] ** 2
        cg = parameters['global_dim']
        big_l = parameters['local_dim']
        d = parameters['attn_dim']
        ncls = parameters['num_classes']
        s = 0.1
        # GlobalNetwork weights: feature-major, bf16 where they feed the MXU.
        w1 = jax.random.normal(ks[0], (pd_g, cg), jnp.float32) * s
        w2 = jax.random.normal(ks[1], (cg, ncls), jnp.float32) * s
        self.w1t_bf = jnp.asarray(w1.T, jnp.bfloat16)            # (Cg, pd_g)
        self.b1 = jnp.zeros((cg, 1), jnp.float32)
        self.vpu_saliency = ncls <= 4
        # VPU path keeps w2 as (Cg, ncls); MXU path wants (ncls, Cg).
        self.w2_k = (jnp.asarray(w2, jnp.float32) if self.vpu_saliency
                     else jnp.asarray(w2.T, jnp.float32))
        self.b2 = jnp.zeros((ncls, 1), jnp.float32)
        # LocalNetwork
        wl = jax.random.normal(ks[2], (pd_l, big_l), jnp.float32) * s
        self.wl_bf = jnp.asarray(wl, jnp.bfloat16)
        self.bl = jnp.zeros((1, big_l), jnp.float32)
        # AttentionModule (gated attention); u|v concatenated for one matmul.
        attn_u = jax.random.normal(ks[3], (big_l, d), jnp.float32) * s
        attn_v = jax.random.normal(ks[4], (big_l, d), jnp.float32) * s
        self.attn_uv = jnp.concatenate([attn_u, attn_v], axis=1)        # (L, 2D)
        self.attn_w_row = (jax.random.normal(ks[5], (d, 1), jnp.float32) * s).T  # (1, D)

    def forward(self, x_original):
        p = self.p
        n, _, big_h, big_w = x_original.shape
        pg = p['global_patch']
        h_cam, w_cam = big_h // pg, big_w // pg
        hw = h_cam * w_cam
        cg, big_l, ncls = p['global_dim'], p['local_dim'], p['num_classes']
        d = p['attn_dim']
        k = p['num_crops']
        crop_shape = tuple(p['crop_shape'])
        lp = p['local_patch']

        # ---- GlobalNetwork (Pallas, VMEM-budgeted token tiling, bf16 I/O) ---- #
        # TODO(synk): verify XLA fuses the patchify transpose with the bf16 cast.
        x_patches_t = _patchify_feature_major(x_original[:, 0], pg)     # (N,pd,hw)
        x_patches_t = x_patches_t.astype(jnp.bfloat16)
        budget = _vmem_budget_bytes()
        tm = _pick_token_tile(hw, pg * pg, ncls, budget)
        vmem_limit = min(budget + (8 << 20), 96 << 20)
        sal_b_flat, sal_s_flat, gvec = _global_network(
            x_patches_t, self.w1t_bf, self.b1, self.w2_k, self.b2, tm,
            self.vpu_saliency, vmem_limit)
        global_vec = gvec[:, :, 0]                                       # (N, Cg)
        saliency_map = sal_s_flat.astype(jnp.float32).reshape(
            n, ncls, h_cam, w_cam)

        # ---- TopTPercentAggregationFunction (plain JAX glue) ---------------- #
        topt_feature, y_global = _top_t_percent_aggregation(
            sal_s_flat, sal_b_flat, p['percent_t'])

        # ---- RetrieveROIModule + crop extraction (plain JAX glue) ----------- #
        small_x_locations = _retrieve_roi_positions(
            saliency_map, crop_shape, big_h, big_w, k)                   # (N, K, 2)
        patch_locations = _convert_crop_position(
            small_x_locations, (h_cam, w_cam), big_h, big_w, crop_shape) # (N, K, 2)
        crops = _retrieve_crops(x_original, patch_locations, crop_shape) # (N,K,ch,cw)
        patches = crops

        # ---- LocalNetwork + AttentionModule (fused, per-image grid) --------- #
        crops_flat = crops.reshape(n * k, crop_shape[0], crop_shape[1])
        crop_patches = _patchify_token_major(crops_flat, lp)             # (NK, P, pd)
        p_tok = crop_patches.shape[1]
        crop_patches = crop_patches.reshape(n, k * p_tok, lp * lp)       # (N, K*P, pd)
        crop_patches = crop_patches.astype(jnp.bfloat16)
        h_crops, z_out, attn_out = _local_attention(
            crop_patches, self.wl_bf, self.bl,
            self.attn_uv, self.attn_w_row, n, k, p_tok, d)
        z = z_out.reshape(n, big_l)
        patch_attns = attn_out.reshape(n, k)

        # ---- final concat (global max-pool already fused into global kernel) #
        concat_vec = jnp.concatenate([global_vec, z], axis=1)

        # MIL ('gmic') return signature
        return (z, topt_feature, y_global, concat_vec, saliency_map,
                patch_locations, patches, patch_attns, h_crops, global_vec)


if __name__ == "__main__":
    params = {
        'cam_size': (16, 16),
        'crop_shape': (16, 16),
        'percent_t': 0.25,
        'num_crops': 2,
        'global_patch': 4,
        'local_patch': 4,
        'global_dim': 32,
        'local_dim': 32,
        'attn_dim': 16,
        'num_classes': 1,
        'learningtype': 'MIL',
        'model': 'gmic',
    }
    key = jax.random.PRNGKey(0)
    x = jax.random.uniform(key, (2, 1, 64, 64), dtype=jnp.float32)       # N,C,H,W

    model = GMICPallas(params)
    fwd = jax.jit(model.forward)
    outs = fwd(x)
    jax.tree_util.tree_map(jax.block_until_ready, outs)

    (z, topt, y_g, concat_vec, sal, locs, patches_out,
     attns, h_crops, gvec) = outs
    assert z.shape == (2, 32)
    assert topt.shape == (2, 1) and y_g.shape == (2, 1)
    assert concat_vec.shape == (2, 64)
    assert sal.shape == (2, 1, 16, 16)
    assert locs.shape == (2, 2, 2)
    assert patches_out.shape == (2, 2, 16, 16)
    assert attns.shape == (2, 2)
    assert h_crops.shape == (2, 2, 32)
    assert gvec.shape == (2, 32)
    assert bool(jnp.all(jnp.isfinite(z))) and bool(jnp.all(jnp.isfinite(sal)))
    assert bool(jnp.all(jnp.isfinite(attns)))
    # attention weights must form a per-image softmax
    assert bool(jnp.allclose(jnp.sum(attns, axis=1), 1.0, atol=1e-3))
    print("KERNEL_OK")
</pallas_src>

<mosaic_0001>
module attributes {stable_mosaic.version = 11 : i64} {
  func.func @_global_network_kernel(%arg0: i32, %arg1: i32, %arg2: memref<1x16x256xbf16, #tpu.memory_space<vmem>>, %arg3: memref<32x16xbf16, #tpu.memory_space<vmem>>, %arg4: memref<32x1xf32, #tpu.memory_space<vmem>>, %arg5: memref<32x1xf32, #tpu.memory_space<vmem>>, %arg6: memref<1x1xf32, #tpu.memory_space<vmem>>, %arg7: memref<1x1x256xbf16, #tpu.memory_space<vmem>>, %arg8: memref<1x1x256xbf16, #tpu.memory_space<vmem>>, %arg9: memref<1x32x1xf32, #tpu.memory_space<vmem>>) attributes {dimension_semantics = [#tpu.dimension_semantics<parallel>, #tpu.dimension_semantics<arbitrary>], iteration_bounds = array<i64: 2, 1>, scalar_prefetch = 0 : i64, scratch_operands = 0 : i64, tpu.core_type = #tpu.core_type<tc>, window_params = [{transform_indices = @transform_0, window_bounds = array<i64: 1, 16, 256>}, {pipeline_mode = #tpu.pipeline_mode<synchronous>, transform_indices = @transform_1, window_bounds = array<i64: 32, 16>}, {pipeline_mode = #tpu.pipeline_mode<synchronous>, transform_indices = @transform_2, window_bounds = array<i64: 32, 1>}, {pipeline_mode = #tpu.pipeline_mode<synchronous>, transform_indices = @transform_3, window_bounds = array<i64: 32, 1>}, {pipeline_mode = #tpu.pipeline_mode<synchronous>, transform_indices = @transform_4, window_bounds = array<i64: 1, 1>}, {transform_indices = @transform_5, window_bounds = array<i64: 1, 1, 256>}, {transform_indices = @transform_6, window_bounds = array<i64: 1, 1, 256>}, {transform_indices = @transform_7, window_bounds = array<i64: 1, 32, 1>}]} {
    %c0 = arith.constant 0 : index
    %c0_0 = arith.constant 0 : index
    %c0_1 = arith.constant 0 : index
    %0 = vector.load %arg2[%c0, %c0_0, %c0_1] : memref<1x16x256xbf16, #tpu.memory_space<vmem>>, vector<1x16x256xbf16>
    %1 = vector.shape_cast %0 : vector<1x16x256xbf16> to vector<16x256xbf16>
    %c0_2 = arith.constant 0 : index
    %c0_3 = arith.constant 0 : index
    %2 = vector.load %arg3[%c0_2, %c0_3] : memref<32x16xbf16, #tpu.memory_space<vmem>>, vector<32x16xbf16>
    %cst = arith.constant dense<0.000000e+00> : vector<32x256xf32>
    %3 = tpu.matmul %2, %1, %cst {dimension_numbers = #tpu.dot_dimension_numbers<[1], [0], [0], [1], [0, 0, 1, 1], [], []>} : vector<32x16xbf16>, vector<16x256xbf16>, vector<32x256xf32> -> vector<32x256xf32>
    %c0_4 = arith.constant 0 : index
    %c0_5 = arith.constant 0 : index
    %4 = vector.load %arg4[%c0_4, %c0_5] : memref<32x1xf32, #tpu.memory_space<vmem>>, vector<32x1xf32>
    %5 = vector.broadcast %4 : vector<32x1xf32> to vector<32x256xf32>
    %6 = arith.addf %3, %5 : vector<32x256xf32>
    %cst_6 = arith.constant 0.000000e+00 : f32
    %7 = vector.broadcast %cst_6 : f32 to vector<32x256xf32>
    %8 = arith.maximumf %6, %7 : vector<32x256xf32>
    %c0_7 = arith.constant 0 : index
    %c0_8 = arith.constant 0 : index
    %9 = vector.load %arg5[%c0_7, %c0_8] : memref<32x1xf32, #tpu.memory_space<vmem>>, vector<32x1xf32>
    %10 = vector.broadcast %9 : vector<32x1xf32> to vector<32x256xf32>
    %11 = arith.mulf %10, %8 : vector<32x256xf32>
    %cst_9 = arith.constant dense<0.000000e+00> : vector<256xf32>
    %12 = vector.multi_reduction <add>, %11, %cst_9 [0] : vector<32x256xf32> to vector<256xf32>
    %13 = vector.shape_cast %12 : vector<256xf32> to vector<1x256xf32>
    %c0_10 = arith.constant 0 : index
    %c0_11 = arith.constant 0 : index
    %14 = vector.load %arg6[%c0_10, %c0_11] : memref<1x1xf32, #tpu.memory_space<vmem>>, vector<1x1xf32>
    %15 = vector.broadcast %14 : vector<1x1xf32> to vector<1x256xf32>
    %16 = arith.addf %13, %15 : vector<1x256xf32>
    %17 = arith.truncf %16 : vector<1x256xf32> to vector<1x256xbf16>
    %c0_12 = arith.constant 0 : index
    %c0_13 = arith.constant 0 : index
    %c0_14 = arith.constant 0 : index
    %18 = vector.load %arg7[%c0_12, %c0_13, %c0_14] : memref<1x1x256xbf16, #tpu.memory_space<vmem>>, vector<1x1x256xbf16>
    %19 = vector.shape_cast %18 : vector<1x1x256xbf16> to vector<1x256xbf16>
    %20 = vector.shape_cast %17 : vector<1x256xbf16> to vector<1x1x256xbf16>
    tpu.vector_store %arg7[%c0_12, %c0_13, %c0_14], %20 {strides = array<i32>} : memref<1x1x256xbf16, #tpu.memory_space<vmem>>, vector<1x1x256xbf16>,
    %21 = arith.negf %16 : vector<1x256xf32>
    %22 = math.exp %21 : vector<1x256xf32>
    %cst_15 = arith.constant 1.000000e+00 : f32
    %23 = vector.broadcast %cst_15 : f32 to vector<1x256xf32>
    %24 = arith.addf %23, %22 : vector<1x256xf32>
    %25 = arith.divf %23, %24 : vector<1x256xf32>
    %26 = arith.truncf %25 : vector<1x256xf32> to vector<1x256xbf16>
    %c0_16 = arith.constant 0 : index
    %c0_17 = arith.constant 0 : index
    %c0_18 = arith.constant 0 : index
    %27 = vector.load %arg8[%c0_16, %c0_17, %c0_18] : memref<1x1x256xbf16, #tpu.memory_space<vmem>>, vector<1x1x256xbf16>
    %28 = vector.shape_cast %27 : vector<1x1x256xbf16> to vector<1x256xbf16>
    %29 = vector.shape_cast %26 : vector<1x256xbf16> to vector<1x1x256xbf16>
    tpu.vector_store %arg8[%c0_16, %c0_17, %c0_18], %29 {strides = array<i32>} : memref<1x1x256xbf16, #tpu.memory_space<vmem>>, vector<1x1x256xbf16>,
    %cst_19 = arith.constant dense<0xFF800000> : vector<32xf32>
    %30 = vector.multi_reduction <maximumf>, %8, %cst_19 [1] : vector<32x256xf32> to vector<32xf32>
    %31 = vector.shape_cast %30 : vector<32xf32> to vector<32x1xf32>
    %c0_i32 = arith.constant 0 : i32
    %32 = arith.cmpi eq, %arg1, %c0_i32 : i32
    %33 = arith.extui %32 : i1 to i32
    %c0_i32_20 = arith.constant 0 : i32
    %34 = arith.cmpi ne, %33, %c0_i32_20 : i32
    scf.if %34 {
      %c0_23 = arith.constant 0 : index
      %c0_24 = arith.constant 0 : index
      %c0_25 = arith.constant 0 : index
      %38 = vector.load %arg9[%c0_23, %c0_24, %c0_25] : memref<1x32x1xf32, #tpu.memory_space<vmem>>, vector<1x32x1xf32>
      %39 = vector.shape_cast %38 : vector<1x32x1xf32> to vector<32x1xf32>
      %40 = vector.shape_cast %31 : vector<32x1xf32> to vector<1x32x1xf32>
      tpu.vector_store %arg9[%c0_23, %c0_24, %c0_25], %40 {strides = array<i32>} : memref<1x32x1xf32, #tpu.memory_space<vmem>>, vector<1x32x1xf32>,
    } else {
    }
    %c0_i32_21 = arith.constant 0 : i32
    %35 = arith.cmpi sgt, %arg1, %c0_i32_21 : i32
    %36 = arith.extui %35 : i1 to i32
    %c0_i32_22 = arith.constant 0 : i32
    %37 = arith.cmpi ne, %36, %c0_i32_22 : i32
    scf.if %37 {
      %c0_23 = arith.constant 0 : index
      %c0_24 = arith.constant 0 : index
      %c0_25 = arith.constant 0 : index
      %38 = vector.load %arg9[%c0_23, %c0_24, %c0_25] : memref<1x32x1xf32, #tpu.memory_space<vmem>>, vector<1x32x1xf32>
      %39 = vector.shape_cast %38 : vector<1x32x1xf32> to vector<32x1xf32>
      %40 = arith.maximumf %39, %31 : vector<32x1xf32>
      %c0_26 = arith.constant 0 : index
      %c0_27 = arith.constant 0 : index
      %c0_28 = arith.constant 0 : index
      %41 = vector.load %arg9[%c0_26, %c0_27, %c0_28] : memref<1x32x1xf32, #tpu.memory_space<vmem>>, vector<1x32x1xf32>
      %42 = vector.shape_cast %41 : vector<1x32x1xf32> to vector<32x1xf32>
      %43 = vector.shape_cast %40 : vector<32x1xf32> to vector<1x32x1xf32>
      tpu.vector_store %arg9[%c0_26, %c0_27, %c0_28], %43 {strides = array<i32>} : memref<1x32x1xf32, #tpu.memory_space<vmem>>, vector<1x32x1xf32>,
    } else {
    }
    return
  }
  func.func @transform_0(%arg0: i32, %arg1: i32) -> (i32, i32, i32) {
    %c0_i32 = arith.constant 0 : i32
    %c0_i32_0 = arith.constant 0 : i32
    return %arg0, %c0_i32, %arg1 : i32, i32, i32
  }
  func.func @transform_1(%arg0: i32, %arg1: i32) -> (i32, i32) {
    %c0_i32 = arith.constant 0 : i32
    %c0_i32_0 = arith.constant 0 : i32
    %c0_i32_1 = arith.constant 0 : i32
    return %c0_i32, %c0_i32_0 : i32, i32
  }
  func.func @transform_2(%arg0: i32, %arg1: i32) -> (i32, i32) {
    %c0_i32 = arith.constant 0 : i32
    %c0_i32_0 = arith.constant 0 : i32
    %c0_i32_1 = arith.constant 0 : i32
    return %c0_i32, %c0_i32_0 : i32, i32
  }
  func.func @transform_3(%arg0: i32, %arg1: i32) -> (i32, i32) {
    %c0_i32 = arith.constant 0 : i32
    %c0_i32_0 = arith.constant 0 : i32
    %c0_i32_1 = arith.constant 0 : i32
    return %c0_i32, %c0_i32_0 : i32, i32
  }
  func.func @transform_4(%arg0: i32, %arg1: i32) -> (i32, i32) {
    %c0_i32 = arith.constant 0 : i32
    %c0_i32_0 = arith.constant 0 : i32
    %c0_i32_1 = arith.constant 0 : i32
    return %c0_i32, %c0_i32_0 : i32, i32
  }
  func.func @transform_5(%arg0: i32, %arg1: i32) -> (i32, i32, i32) {
    %c0_i32 = arith.constant 0 : i32
    %c0_i32_0 = arith.constant 0 : i32
    return %arg0, %c0_i32, %arg1 : i32, i32, i32
  }
  func.func @transform_6(%arg0: i32, %arg1: i32) -> (i32, i32, i32) {
    %c0_i32 = arith.constant 0 : i32
    %c0_i32_0 = arith.constant 0 : i32
    return %arg0, %c0_i32, %arg1 : i32, i32, i32
  }
  func.func @transform_7(%arg0: i32, %arg1: i32) -> (i32, i32, i32) {
    %c0_i32 = arith.constant 0 : i32
    %c0_i32_0 = arith.constant 0 : i32
    %c0_i32_1 = arith.constant 0 : i32
    return %arg0, %c0_i32, %c0_i32_0 : i32, i32, i32
  }
}

module attributes {stable_mosaic.version = 11 : i64} {
  func.func @_local_attention_kernel(%arg0: i32, %arg1: memref<1x32x16xbf16, #tpu.memory_space<vmem>>, %arg2: memref<16x32xbf16, #tpu.memory_space<vmem>>, %arg3: memref<1x32xf32, #tpu.memory_space<vmem>>, %arg4: memref<32x32xf32, #tpu.memory_space<vmem>>, %arg5: memref<1x16xf32, #tpu.memory_space<vmem>>, %arg6: memref<1x2x32xf32, #tpu.memory_space<vmem>>, %arg7: memref<1x1x32xf32, #tpu.memory_space<vmem>>, %arg8: memref<1x2x1xf32, #tpu.memory_space<vmem>>) attributes {dimension_semantics = [#tpu.dimension_semantics<parallel>], iteration_bounds = array<i64: 2>, scalar_prefetch = 0 : i64, scratch_operands = 0 : i64, tpu.core_type = #tpu.core_type<tc>, window_params = [{transform_indices = @transform_0, window_bounds = array<i64: 1, 32, 16>}, {pipeline_mode = #tpu.pipeline_mode<synchronous>, transform_indices = @transform_1, window_bounds = array<i64: 16, 32>}, {pipeline_mode = #tpu.pipeline_mode<synchronous>, transform_indices = @transform_2, window_bounds = array<i64: 1, 32>}, {pipeline_mode = #tpu.pipeline_mode<synchronous>, transform_indices = @transform_3, window_bounds = array<i64: 32, 32>}, {pipeline_mode = #tpu.pipeline_mode<synchronous>, transform_indices = @transform_4, window_bounds = array<i64: 1, 16>}, {transform_indices = @transform_5, window_bounds = array<i64: 1, 2, 32>}, {transform_indices = @transform_6, window_bounds = array<i64: 1, 1, 32>}, {transform_indices = @transform_7, window_bounds = array<i64: 1, 2, 1>}]} {
    %c0 = arith.constant 0 : index
    %c0_0 = arith.constant 0 : index
    %c0_1 = arith.constant 0 : index
    %0 = vector.load %arg1[%c0, %c0_0, %c0_1] : memref<1x32x16xbf16, #tpu.memory_space<vmem>>, vector<1x32x16xbf16>
    %1 = vector.shape_cast %0 : vector<1x32x16xbf16> to vector<32x16xbf16>
    %c0_2 = arith.constant 0 : index
    %c0_3 = arith.constant 0 : index
    %2 = vector.load %arg2[%c0_2, %c0_3] : memref<16x32xbf16, #tpu.memory_space<vmem>>, vector<16x32xbf16>
    %cst = arith.constant dense<0.000000e+00> : vector<32x32xf32>
    %3 = tpu.matmul %1, %2, %cst {dimension_numbers = #tpu.dot_dimension_numbers<[1], [0], [0], [1], [0, 0, 1, 1], [], []>} : vector<32x16xbf16>, vector<16x32xbf16>, vector<32x32xf32> -> vector<32x32xf32>
    %c0_4 = arith.constant 0 : index
    %c0_5 = arith.constant 0 : index
    %4 = vector.load %arg3[%c0_4, %c0_5] : memref<1x32xf32, #tpu.memory_space<vmem>>, vector<1x32xf32>
    %5 = vector.broadcast %4 : vector<1x32xf32> to vector<32x32xf32>
    %6 = arith.addf %3, %5 : vector<32x32xf32>
    %cst_6 = arith.constant 0.000000e+00 : f32
    %7 = vector.broadcast %cst_6 : f32 to vector<32x32xf32>
    %8 = arith.maximumf %6, %7 : vector<32x32xf32>
    %9 = vector.shape_cast %8 : vector<32x32xf32> to vector<2x16x32xf32>
    %cst_7 = arith.constant dense<0xFF800000> : vector<2x32xf32>
    %10 = vector.multi_reduction <maximumf>, %9, %cst_7 [1] : vector<2x16x32xf32> to vector<2x32xf32>
    %c0_8 = arith.constant 0 : index
    %c0_9 = arith.constant 0 : index
    %c0_10 = arith.constant 0 : index
    %11 = vector.load %arg6[%c0_8, %c0_9, %c0_10] : memref<1x2x32xf32, #tpu.memory_space<vmem>>, vector<1x2x32xf32>
    %12 = vector.shape_cast %11 : vector<1x2x32xf32> to vector<2x32xf32>
    %13 = vector.shape_cast %10 : vector<2x32xf32> to vector<1x2x32xf32>
    tpu.vector_store %arg6[%c0_8, %c0_9, %c0_10], %13 {strides = array<i32>} : memref<1x2x32xf32, #tpu.memory_space<vmem>>, vector<1x2x32xf32>,
    %c0_11 = arith.constant 0 : index
    %c0_12 = arith.constant 0 : index
    %14 = vector.load %arg4[%c0_11, %c0_12] : memref<32x32xf32, #tpu.memory_space<vmem>>, vector<32x32xf32>
    %cst_13 = arith.constant dense<0.000000e+00> : vector<2x32xf32>
    %15 = tpu.matmul %10, %14, %cst_13 {dimension_numbers = #tpu.dot_dimension_numbers<[1], [0], [0], [1], [0, 0, 1, 1], [], []>} : vector<2x32xf32>, vector<32x32xf32>, vector<2x32xf32> -> vector<2x32xf32>
    %16 = vector.extract_strided_slice %15 {offsets = [0, 0], sizes = [2, 16], strides = [1, 1]} : vector<2x32xf32> to vector<2x16xf32>
    %17 = arith.negf %16 : vector<2x16xf32>
    %18 = math.exp %17 : vector<2x16xf32>
    %cst_14 = arith.constant 1.000000e+00 : f32
    %19 = vector.broadcast %cst_14 : f32 to vector<2x16xf32>
    %20 = arith.addf %19, %18 : vector<2x16xf32>
    %21 = arith.divf %19, %20 : vector<2x16xf32>
    %22 = vector.extract_strided_slice %15 {offsets = [0, 16], sizes = [2, 16], strides = [1, 1]} : vector<2x32xf32> to vector<2x16xf32>
    %23 = math.tanh %22 : vector<2x16xf32>
    %24 = arith.mulf %21, %23 : vector<2x16xf32>
    %c0_15 = arith.constant 0 : index
    %c0_16 = arith.constant 0 : index
    %25 = vector.load %arg5[%c0_15, %c0_16] : memref<1x16xf32, #tpu.memory_space<vmem>>, vector<1x16xf32>
    %26 = vector.broadcast %25 : vector<1x16xf32> to vector<2x16xf32>
    %27 = arith.mulf %24, %26 : vector<2x16xf32>
    %cst_17 = arith.constant dense<0.000000e+00> : vector<2xf32>
    %28 = vector.multi_reduction <add>, %27, %cst_17 [1] : vector<2x16xf32> to vector<2xf32>
    %29 = vector.shape_cast %28 : vector<2xf32> to vector<2x1xf32>
    %cst_18 = arith.constant dense<0xFF800000> : vector<1xf32>
    %30 = vector.multi_reduction <maximumf>, %29, %cst_18 [0] : vector<2x1xf32> to vector<1xf32>
    %31 = vector.shape_cast %30 : vector<1xf32> to vector<1x1xf32>
    %32 = vector.broadcast %31 : vector<1x1xf32> to vector<2x1xf32>
    %33 = arith.subf %29, %32 : vector<2x1xf32>
    %34 = math.exp %33 : vector<2x1xf32>
    %cst_19 = arith.constant dense<0.000000e+00> : vector<1xf32>
    %35 = vector.multi_reduction <add>, %34, %cst_19 [0] : vector<2x1xf32> to vector<1xf32>
    %36 = vector.shape_cast %35 : vector<1xf32> to vector<1x1xf32>
    %37 = vector.broadcast %36 : vector<1x1xf32> to vector<2x1xf32>
    %38 = arith.divf %34, %37 : vector<2x1xf32>
    %c0_20 = arith.constant 0 : index
    %c0_21 = arith.constant 0 : index
    %c0_22 = arith.constant 0 : index
    %39 = vector.load %arg8[%c0_20, %c0_21, %c0_22] : memref<1x2x1xf32, #tpu.memory_space<vmem>>, vector<1x2x1xf32>
    %40 = vector.shape_cast %39 : vector<1x2x1xf32> to vector<2x1xf32>
    %41 = vector.shape_cast %38 : vector<2x1xf32> to vector<1x2x1xf32>
    tpu.vector_store %arg8[%c0_20, %c0_21, %c0_22], %41 {strides = array<i32>} : memref<1x2x1xf32, #tpu.memory_space<vmem>>, vector<1x2x1xf32>,
    %42 = vector.broadcast %38 : vector<2x1xf32> to vector<2x32xf32>
    %43 = arith.mulf %42, %10 : vector<2x32xf32>
    %cst_23 = arith.constant dense<0.000000e+00> : vector<32xf32>
    %44 = vector.multi_reduction <add>, %43, %cst_23 [0] : vector<2x32xf32> to vector<32xf32>
    %45 = vector.shape_cast %44 : vector<32xf32> to vector<1x32xf32>
    %c0_24 = arith.constant 0 : index
    %c0_25 = arith.constant 0 : index
    %c0_26 = arith.constant 0 : index
    %46 = vector.load %arg7[%c0_24, %c0_25, %c0_26] : memref<1x1x32xf32, #tpu.memory_space<vmem>>, vector<1x1x32xf32>
    %47 = vector.shape_cast %46 : vector<1x1x32xf32> to vector<1x32xf32>
    %48 = vector.shape_cast %45 : vector<1x32xf32> to vector<1x1x32xf32>
    tpu.vector_store %arg7[%c0_24, %c0_25, %c0_26], %48 {strides = array<i32>} : memref<1x1x32xf32, #tpu.memory_space<vmem>>, vector<1x1x32xf32>,
    return
  }
  func.func @transform_0(%arg0: i32) -> (i32, i32, i32) {
    %c0_i32 = arith.constant 0 : i32
    %c0_i32_0 = arith.constant 0 : i32
    %c0_i32_1 = arith.constant 0 : i32
    return %arg0, %c0_i32, %c0_i32_0 : i32, i32, i32
  }
  func.func @transform_1(%arg0: i32) -> (i32, i32) {
    %c0_i32 = arith.constant 0 : i32
    %c0_i32_0 = arith.constant 0 : i32
    %c0_i32_1 = arith.constant 0 : i32
    return %c0_i32, %c0_i32_0 : i32, i32
  }
  func.func @transform_2(%arg0: i32) -> (i32, i32) {
    %c0_i32 = arith.constant 0 : i32
    %c0_i32_0 = arith.constant 0 : i32
    %c0_i32_1 = arith.constant 0 : i32
    return %c0_i32, %c0_i32_0 : i32, i32
  }
  func.func @transform_3(%arg0: i32) -> (i32, i32) {
    %c0_i32 = arith.constant 0 : i32
    %c0_i32_0 = arith.constant 0 : i32
    %c0_i32_1 = arith.constant 0 : i32
    return %c0_i32, %c0_i32_0 : i32, i32
  }
  func.func @transform_4(%arg0: i32) -> (i32, i32) {
    %c0_i32 = arith.constant 0 : i32
    %c0_i32_0 = arith.constant 0 : i32
    %c0_i32_1 = arith.constant 0 : i32
    return %c0_i32, %c0_i32_0 : i32, i32
  }
  func.func @transform_5(%arg0: i32) -> (i32, i32, i32) {
    %c0_i32 = arith.constant 0 : i32
    %c0_i32_0 = arith.constant 0 : i32
    %c0_i32_1 = arith.constant 0 : i32
    return %arg0, %c0_i32, %c0_i32_0 : i32, i32, i32
  }
  func.func @transform_6(%arg0: i32) -> (i32, i32, i32) {
    %c0_i32 = arith.constant 0 : i32
    %c0_i32_0 = arith.constant 0 : i32
    %c0_i32_1 = arith.constant 0 : i32
    return %arg0, %c0_i32, %c0_i32_0 : i32, i32, i32
  }
  func.func @transform_7(%arg0: i32) -> (i32, i32, i32) {
    %c0_i32 = arith.constant 0 : i32
    %c0_i32_0 = arith.constant 0 : i32
    %c0_i32_1 = arith.constant 0 : i32
    return %arg0, %c0_i32, %c0_i32_0 : i32, i32, i32
  }
}

</mosaic_0001>

<bundles_post_ra>
// kernel: forward.2
= control target key start
LH: loop header
LB: loop body
LE: loop exit
PB: predicated region body
PF: predicated region fallthrough
CT: control target
= control target key end

     0   :  { %s1787_s0 = inlined_call_operand.hbm [shape: bf16[2,16,256], index: 0, kind: input, shape index: {}]   ;;  %s1788_s1 = inlined_call_operand.hbm [shape: bf16[32,16], index: 1, kind: input, shape index: {}]   ;;  %s1789_s2 = inlined_call_operand.hbm [shape: f32[32,1], index: 2, kind: input, shape index: {}]   ;;  %s1790_s3 = inlined_call_operand.hbm [shape: f32[32,1], index: 3, kind: input, shape index: {}]   ;;  %s1791_s4 = inlined_call_operand.<no memory space> [shape: f32[1,1], index: 4, kind: input, shape index: {}]   ;;  %s1792_s5 = inlined_call_operand.hbm [shape: bf16[2,1,256], index: 5, kind: output, shape index: {0}]   ;;  %s1793_s6 = inlined_call_operand.hbm [shape: bf16[2,1,256], index: 6, kind: output, shape index: {1}]   ;;  %s1794_s7 = inlined_call_operand.hbm [shape: f32[2,32,1], index: 7, kind: output, shape index: {2}]  }
   0x1   :  { %1800 = sst [smem:[#allocation21_spill]] %s1788_s1  ;;  %v13_v0 = vstv %s1791_s4 }
   0x2   :  { %14 = vst [vmem:[#allocation2] sm:$0x1] %v13_v0 }
   0x3   :  { %15 = vsyncpa [#allocation4], 0 }
   0x4   :  { %17 = vsyncpa [#allocation4 + $0x1], 0 }
   0x5   :  { %18 = vsyncpa [#allocation7], 0 }
   0x6   :  { %19 = vsyncpa [#allocation10], 0 }
   0x7   :  { %20 = vsyncpa [#allocation5], 0 }
   0x8   :  { %22 = vsyncpa [#allocation5 + $0x1], 0 }
   0x9   :  { %23 = vsyncpa [#allocation13], 0 }
   0xa   :  { %25 = vsyncpa [#allocation13 + $0x1], 0  ;;  %s1399_s26 = smov 0   ;;  %s1401_s27 = smov 0  }
   0xb   :  { %s1403_s28 = smov 0   ;;  %s1405_s29 = smov 0  }
   0xc   :  { %s1407_s30 = smov 0   ;;  %s1409_s4 = smov 0  }
   0xd LB: > { %s1430_s8 = sadd.s32 4294967295, %s1339_s4   ;;  %s1796_s9 = sadd.s32 4294967294, %s1339_s4   ;;  %s1339_s4 = sphi %s1409_s4, %s31_s4   ;;  %s1335_s30 = sphi %s1407_s30, %s1830_s30   ;;  %s1331_s29 = sphi %s1405_s29, %s1829_s29   ;;  %s1327_s28 = sphi %s1403_s28, %s1828_s28   ;;  %s1323_s27 = sphi %s1401_s27, %s1827_s27   ;;  %s1319_s26 = sphi %s1399_s26, %s1826_s26  }
   0xe   : > { %p65_p0 = scmp.ne.s32.totalorder %s1323_s27, %s1319_s26  ;;  %p1795_p1 = scmp.eq.s32.totalorder %s1430_s8, 0 }
   0xf   : > { %p181_p3 = scmp.eq.s32.totalorder %s1796_s9, 1  ;;  %p906_p5 = scmp.ge.s32.totalorder %s1339_s4, 1 }
  0x10   : > { %p1441_p4 = por %p1795_p1, %p65_p0  ;;  %p242_p7 = scmp.lt.s32.totalorder %s1339_s4, 3 }
  0x11   : > { %p1446_p6 = por %p181_p3, %p65_p0  ;;  %s1341_s13 = smov [#allocation6]  }
  0x12   : > { %s1801_s10 = scalar_select %p1441_p4, 1, 0 }
  0x13   : > { %s1802_s11 = scalar_select %p1446_p6, 1, 0 }
  0x14   : > { %p1451_p8 = pnand %p906_p5, %p242_p7  ;;  %s254_s14 = sshll.u32 %s1341_s13, 4  ;;  %s1455_s14 = int_to_ptr.vmem [resolvable:$true] %s254_s14 }
  0x15   : > { %1803 = sst [smem:[#allocation20_spill]] %s1802_s11  ;;  %s1342_s16 = smov [#allocation8]  }
  0x16   : > { %s1804_s12 = scalar_select %p1451_p8, 1, 0 }
  0x17   : > { %p969_p9 = pneg %p1451_p8  ;;  %s267_s17 = sshll.u32 %s1342_s16, 4  ;;  %s1466_s17 = int_to_ptr.vmem [resolvable:$true] %s267_s17 }
  0x18   : > { %s1806_s1 = sld [smem:[#allocation21_spill]] }
  0x19   : > { %p1462_p11 = pnand %p969_p9, %p1795_p1 }
  0x1b   : > { %p1476_p13 = pneg %p1462_p11 }
  0x1e   : > { %s1075_s20 = scalar_lea.hbm %s1806_s1, 256 }
  0x1f   : > { %p1076_p12 = scmp.ne.s32.totalorder %s1806_s1, %s1075_s20  ;;  %p1082_p5 = scmp.lt.u32.totalorder %s1075_s20, %s1806_s1 }
  0x21   : > { %p1078_p0 = pnand %p1476_p13, %p1076_p12 }
  0x23   : > { %p1079_p3 = pneg %p1078_p0 }
  0x25   : > { %p1084_p7 = pnand %p1082_p5, %p1079_p3 }
  0x27   : > { %1087 = shalt.err (!%p1084_p7)
}
  0x28   : > { %s1088_s13 = scalar_lea.vmem %s1455_s14, 256  ;;  %p1096_p2 = scmp.lt.s32.totalorder %s1455_s14, %s1455_s14 }
  0x29   : > { %p1089_p9 = scmp.ne.s32.totalorder %s1455_s14, %s1088_s13  ;;  %p1097_p6 = scmp.lt.s32.totalorder %s1088_s13, %s1088_s13 }
  0x2b   : > { %p1091_p10 = pnand %p1089_p9, %p1476_p13  ;;  %p1098_p12 = por %p1097_p6, %p1096_p2 }
  0x2d   : > { %p1092_p1 = pneg %p1091_p10 }
  0x2f   : > { %p1099_p0 = pnand %p1098_p12, %p1092_p1 }
  0x31   : > { %1102 = shalt.err (!%p1099_p0)
}
  0x32   : > { %s1343_s16 = smov 64   ;;  %s1344_s18 = smov 4  }
  0x33   : > { %972 = dma.hbm_to_vmem [thread:$0]  (!%p1462_p11), %s1806_s1, 256, %s1455_s14, [#allocation7], %s1343_s16, %s1343_s16, %s1344_s18  }
  0x34   : > { %s1103_s24 = scalar_lea.hbm %s1789_s2, 512 }
  0x35   : > { %p1104_p2 = scmp.ne.s32.totalorder %s1789_s2, %s1103_s24  ;;  %p1110_p10 = scmp.lt.u32.totalorder %s1103_s24, %s1789_s2 }
  0x37   : > { %p1106_p1 = pnand %p1104_p2, %p1476_p13 }
  0x39   : > { %p1107_p6 = pneg %p1106_p1 }
  0x3b   : > { %p1112_p3 = pnand %p1110_p10, %p1107_p6 }
  0x3d   : > { %1115 = shalt.err (!%p1112_p3)
}
  0x3e   : > { %s1116_s14 = scalar_lea.vmem %s1466_s17, 512  ;;  %p1124_p12 = scmp.lt.s32.totalorder %s1466_s17, %s1466_s17 }
  0x3f   : > { %p1117_p5 = scmp.ne.s32.totalorder %s1466_s17, %s1116_s14  ;;  %p1125_p0 = scmp.lt.s32.totalorder %s1116_s14, %s1116_s14 }
  0x41   : > { %p1119_p7 = pnand %p1117_p5, %p1476_p13  ;;  %p1126_p2 = por %p1125_p0, %p1124_p12 }
  0x43   : > { %p1120_p9 = pneg %p1119_p7 }
  0x45   : > { %p1127_p1 = pnand %p1126_p2, %p1120_p9 }
  0x47   : > { %1130 = shalt.err (!%p1127_p1)
}
  0x48   : > { %s1345_s9 = smov 128   ;;  %s1346_s11 = smov 8  }
  0x49   : > { %975 = dma.hbm_to_vmem [thread:$0]  (!%p1462_p11), %s1789_s2, 512, %s1466_s17, [#allocation7], %s1345_s9, %s1345_s9, %s1346_s11  }
  0x4a   : > { %s1347_s19 = smov [#allocation9]   ;;  %s1131_s24 = scalar_lea.hbm %s1790_s3, 512 }
  0x4b   : > { %s280_s20 = sshll.u32 %s1347_s19, 4  ;;  %p1132_p6 = scmp.ne.s32.totalorder %s1790_s3, %s1131_s24  ;;  %s281_s20 = int_to_ptr.vmem [resolvable:$true] %s280_s20 }
  0x4c   : > { %p1138_p5 = scmp.lt.u32.totalorder %s1131_s24, %s1790_s3 }
  0x4d   : > { %p1134_p10 = pnand %p1132_p6, %p1476_p13 }
  0x4f   : > { %p1135_p3 = pneg %p1134_p10 }
  0x51   : > { %p1140_p7 = pnand %p1138_p5, %p1135_p3 }
  0x53   : > { %1143 = shalt.err (!%p1140_p7)
}
  0x54   : > { %s1144_s17 = scalar_lea.vmem %s281_s20, 512  ;;  %p1152_p2 = scmp.lt.s32.totalorder %s281_s20, %s281_s20 }
  0x55   : > { %p1145_p9 = scmp.ne.s32.totalorder %s281_s20, %s1144_s17  ;;  %p1153_p1 = scmp.lt.s32.totalorder %s1144_s17, %s1144_s17 }
  0x57   : > { %p1147_p12 = pnand %p1145_p9, %p1476_p13  ;;  %p1154_p4 = por %p1153_p1, %p1152_p2 }
  0x59   : > { %p1148_p0 = pneg %p1147_p12 }
  0x5b   : > { %p1155_p8 = pnand %p1154_p4, %p1148_p0 }
  0x5d   : > { %1158 = shalt.err (!%p1155_p8)
}
  0x5e   : > { %978 = dma.hbm_to_vmem [thread:$0]  (!%p1462_p11), %s1790_s3, 512, %s281_s20, [#allocation10], %s1345_s9, %s1345_s9, %s1346_s11  }
  0x5f   : > { %s43_s23 = sadd.s32 1, %s1335_s30  ;;  %s52_s15 = sadd.s32 1, %s1327_s28 }
  0x60   : > { %p45_p4 = scmp.ge.s32.totalorder %s43_s23, 2  ;;  %p59_p8 = scmp.ne.s32.totalorder %s1327_s28, %s1323_s27 }
  0x61   : > { %p60_p13 = scmp.eq.s32.totalorder %s1339_s4, 0  ;;  %p1809_p10 = scmp.eq.s32.totalorder %s1430_s8, 1 }
  0x62   : > { %s1832_s23 = smov (%p45_p4, %s43_s23), 0  ;;  %p996_p11 = scmp.lt.s32.totalorder %s1339_s4, 2 }
  0x63   : > { %p1551_p6 = por %p60_p13, %p59_p8  ;;  %p1557_p3 = por %p1809_p10, %p59_p8 }
  0x64   : > { %s47_s21 = ssub.s32 %s1335_s30, %s1832_s23  ;;  %s297_s20 = sand.u32 1, %s1327_s28  }
  0x65   : > { %p50_p5 = scmp.eq.s32.totalorder %s47_s21, 0  ;;  %s911_s22 = sshll.u32 %s297_s20, 4 }
  0x66   : > { %s943_s25 = sshll.u32 %s1335_s30, 8  ;;  %s301_s1 = scalar_lea.vmem [#allocation3], %s911_s22 }
  0x67   : > { %s1566_s24 = scalar_select %p50_p5, %s1327_s28, %s52_s15  }
  0x68   : > { %s1572_s17 = scalar_lea.hbm %s1787_s0, %s943_s25  ;;  %s310_s16 = sshll.u32 %s301_s1, 4  ;;  %s1574_s16 = int_to_ptr.vmem [resolvable:$true] %s310_s16 }
  0x69   : > { %p1578_p7 = pnand %p996_p11, %p1551_p6  ;;  %s1582_s15 = scalar_lea.sflag [#allocation4], %s297_s20 }
  0x6a   : > { %s1159_s13 = scalar_lea.hbm %s1572_s17, 256  ;;  %s1164_s18 = scalar_lea.hbm %s1787_s0, 512 }
  0x6b   : > { %p1160_p9 = scmp.ne.s32.totalorder %s1572_s17, %s1159_s13  ;;  %p1161_p12 = pneg %p1578_p7 }
  0x6c   : > { %p1165_p1 = scmp.lt.u32.totalorder %s1572_s17, %s1787_s0  ;;  %p1166_p4 = scmp.lt.u32.totalorder %s1164_s18, %s1159_s13 }
  0x6d   : > { %p1162_p0 = pnand %p1161_p12, %p1160_p9  ;;  %p1168_p13 = scmp.lt.u32.totalorder %s1159_s13, %s1572_s17 }
  0x6e   : > { %p1167_p8 = por %p1166_p4, %p1165_p1 }
  0x6f   : > { %p1163_p2 = pneg %p1162_p0 }
  0x70   : > { %p1169_p6 = por %p1168_p13, %p1167_p8 }
  0x72   : > { %p1170_p10 = pnand %p1169_p6, %p1163_p2 }
  0x74   : > { %1173 = shalt.err (!%p1170_p10)
}
  0x75   : > { %s1174_s20 = scalar_lea.vmem %s1574_s16, 256  ;;  %s1348_s22 = smov [#allocation3]  }
  0x76   : > { %p1175_p11 = scmp.ne.s32.totalorder %s1574_s16, %s1174_s20  ;;  %s1179_s25 = sshll.u32 %s1348_s22, 4  ;;  %s1180_s25 = int_to_ptr.vmem [resolvable:$false] %s1179_s25 }
  0x77   : > { %s1181_s14 = scalar_lea.vmem %s1180_s25, 512  ;;  %p1182_p0 = scmp.lt.s32.totalorder %s1574_s16, %s1180_s25 }
  0x78   : > { %p1177_p5 = pnand %p1175_p11, %p1161_p12  ;;  %p1183_p1 = scmp.lt.s32.totalorder %s1181_s14, %s1174_s20 }
  0x7a   : > { %p1178_p9 = pneg %p1177_p5  ;;  %p1184_p4 = por %p1183_p1, %p1182_p0 }
  0x7c   : > { %p1185_p8 = pnand %p1184_p4, %p1178_p9 }
  0x7e   : > { %1188 = shalt.err (!%p1185_p8)
}
  0x7f   : > { %982 = dma.hbm_to_vmem [thread:$0]  (!%p1578_p7), %s1572_s17, 256, %s1574_s16, %s1582_s15, %s1345_s9, %s1345_s9, %s1346_s11  }
  0x80   : > { %p1812_p12 = scmp.ne.s32.totalorder %s1804_s12, 0 }
  0x81   : > { %s1616_s13 = sand.u32 (!%p1812_p12), 1, %s1323_s27   ;;  %p1813_p2 = scmp.ne.s32.totalorder (!%p1812_p12), %s1801_s10, 0 }
  0x82   : > { %322 = sbr.rel (%p1812_p12) target bundleno = 534 (0x216), region = 40  ;;  %s915_s18 = sshll.u32 (!%p1812_p12), %s1616_s13, 4 }
  0x83   : > { %s325_s1 = scalar_lea.sflag (!%p1812_p12), [#allocation4], %s1616_s13  ;;  %s328_s20 = scalar_lea.vmem (!%p1812_p12), [#allocation3], %s915_s18 }
  0x89   : > { %1298 = dma.done.wait (%p1813_p2), %s325_s1, 256  }
  0x8a   : > { %1300 = vsyncadd (%p1813_p2), %s325_s1, 4294967040  ;;  %p1814_p13 = scmp.eq.s32.totalorder %s1430_s8, 0 }
  0x8c   : > { %1302 = dma.done.wait (%p1814_p13), [#allocation7], 768   ;;  %p1815_p7 = pmov %p1814_p13 }
  0x8e   : > { %1304 = vsyncadd (%p1815_p7), [#allocation7], 4294966528  ;;  %p1816_p6 = pmov %p1815_p7 }
  0x90   : > { %1306 = dma.done.wait (%p1816_p6), [#allocation10], 512   ;;  %p1817_p10 = pmov %p1816_p6 }
  0x91   : > { %v1349_v1 = vmov 0   ;;  %v1062_v2 = vld [vmem:[%s328_s20 + $0x4] ss:$8 sps:$4 sm:$0xff]   ;;  %v1064_v3 = vld [vmem:[%s328_s20] ss:$8 sps:$4 sm:$0xff]   ;;  %vm435_vm0 = vcmask 130048   ;;  %v559_v63 = vlaneseq }
  0x92   : > { %1308 = vsyncadd (%p1817_p10), [#allocation10], 4294966784  ;;  %474 = vmatprep.mubr.bf16.mxu0 %v1349_v1  ;;  %484 = vmatprep.mubr.bf16.mxu1 %v1349_v1  ;;  %v1065_v4 = vld [vmem:[#allocation6] sm:$0xff]   ;;  %v1066_v5 = vld [vmem:[#allocation6 + $0x8] sm:$0xff]   ;;  %vm585_vm1 = vcmask 1040384   ;;  %s919_s10 = sshll.u32 %s1616_s13, 1 }
  0x93   : > { %1060 = vset.pattern.permute.xlu0 %v1349_v1  ;;  %1061 = vset.pattern.permute.xlu1 %v1349_v1  ;;  %v391_v6 = vld [vmem:[#allocation8] sm:$0xff]  ;;  %v393_v7 = vld [vmem:[#allocation8 + $0x10] sm:$0xff]  ;;  %v392_v8 = vld [vmem:[#allocation8 + $0x8] sm:$0xff]  ;;  %vm586_vm2 = vsmask.f32 256  ;;  %vm588_vm3 = vcmask 1041409  }
  0x94   : > { %442 = vmatprep.subr.bf16.mxu0 %v1062_v2  ;;  %947 = vmatprep.subr.bf16.mxu1 %v1062_v2  ;;  %v394_v9 = vld [vmem:[#allocation8 + $0x18] sm:$0xff]  ;;  %v503_v10 = vld [vmem:[#allocation9] sm:$0xff]  ;;  %v504_v11 = vld [vmem:[#allocation9 + $0x8] sm:$0xff]  ;;  %vm589_vm4 = vsmask.f32 1280  ;;  %s944_s12 = sshll.u32 %s1331_s29, 5 }
  0x95   : > { %443 = vmatpush1.bf16.msra.mxu0 %v1064_v3  ;;  %948 = vmatpush1.bf16.msra.mxu1 %v1064_v3  ;;  %v505_v12 = vld [vmem:[#allocation9 + $0x10] sm:$0xff]  ;;  %v506_v13 = vld [vmem:[#allocation9 + $0x18] sm:$0xff]  ;;  %v553_v14 = vld [vmem:[#allocation2] sm:$0x1]  ;;  %s366_s9 = scalar_lea.vmem [#allocation11], %s919_s10  ;;  %s1657_s21 = scalar_lea.hbm %s1792_s5, %s944_s12 }
  0x96   : > { %397 = vperm.xlu0 %1060, %v391_v6   ;;  %407 = vperm.xlu1 %1061, %v393_v7   ;;  %vm1635_vm5 = vmand %vm585_vm1, %vm586_vm2  ;;  %s695_s11 = sshll.u32 %s366_s9, 4  ;;  %s669_s15 = scalar_lea.sflag [#allocation5], %s1616_s13  ;;  %s1659_s11 = int_to_ptr.vmem [resolvable:$true] %s695_s11 }
  0x97   : > { %vm1639_vm6 = vmand %vm588_vm3, %vm589_vm4  ;;  %s1189_s22 = scalar_lea.vmem %s1659_s11, 32  ;;  %s1351_s25 = smov [#allocation11]  }
  0x98   : > { %926 = vmatmul.mubr.msk.bf16.vlgmr.msra.gmra.mrb[0].mxu0 %vm435_vm0, %v1065_v4  ;;  %927 = vmatmul.mubr.msk.bf16.vlgmr.msra.gmra.mrb[0].mxu1 %vm435_vm0, %v1066_v5  ;;  %v560_v4 = vshrl.u32 %v559_v63, 7  ;;  %vm591_vm7 = vmor %vm1639_vm6, %vm1635_vm5  ;;  %p1190_p11 = scmp.ne.s32.totalorder %s1659_s11, %s1189_s22  ;;  %s1193_s14 = sshll.u32 %s1351_s25, 4  ;;  %s1194_s14 = int_to_ptr.vmem [resolvable:$false] %s1193_s14 }
  0x99   : > { %s1195_s18 = scalar_lea.vmem %s1194_s14, 64  ;;  %p1196_p0 = scmp.lt.s32.totalorder %s1659_s11, %s1194_s14 }
  0x9a   : > { %402 = vperm.xlu0 %1060, %v392_v8   ;;  %412 = vperm.xlu1 %1061, %v394_v9   ;;  %v1350_v8 = vmov 1966171168   ;;  %p1191_p5 = pnand %p1190_p11, %p1557_p3  ;;  %p1197_p1 = scmp.lt.s32.totalorder %s1195_s18, %s1189_s22 }
  0x9b   : > { %v571_v9 = vunpack.c.l.s4 %v1350_v8 }
  0x9c   : > { %p1192_p9 = pneg %p1191_p5  ;;  %p1198_p4 = por %p1197_p1, %p1196_p0 }
  0x9e   : > { %509 = vperm.xlu0 %1060, %v503_v10   ;;  %514 = vperm.xlu1 %1061, %v504_v11   ;;  %v561_v11 = vsub.s32 0, %v560_v4  ;;  %p1199_p8 = pnand %p1198_p4, %p1192_p9 }
  0xa2   : > { %519 = vperm.xlu0 %1060, %v505_v12   ;;  %524 = vperm.xlu1 %1061, %v506_v13  }
  0xa6   : > { %556 = vperm.xlu0 %1060, %v553_v14  }
 0x115   : > { %v398_v15 = vpop.permute.xlu0 %397  ;;  %v408_v16 = vpop.permute.xlu1 %407 }
 0x119   : > { %v403_v17 = vpop.permute.xlu0 %402  ;;  %v413_v18 = vpop.permute.xlu1 %412 }
 0x11d   : > { %v510_v19 = vpop.permute.xlu0 %509  ;;  %v515_v35 = vpop.permute.xlu1 %514 }
 0x121   : > { %v520_v49 = vpop.permute.xlu0 %519  ;;  %v525_v57 = vpop.permute.xlu1 %524 }
 0x125   : > { %v557_v13 = vpop.permute.xlu0 %556 }
 0x16b   : > { %v476_v20 = vpop.f32.mrb[0].mxu0  ;;  %v486_v21 = vpop.f32.mrb[0].mxu1 }
 0x16c   : > { %v477_v22 = vadd.f32 %v476_v20, %v398_v15  ;;  %v487_v23 = vadd.f32 %v486_v21, %v408_v16  ;;  %v478_v24 = vpop.f32.mrb[1].mxu0  ;;  %v488_v25 = vpop.f32.mrb[1].mxu1 }
 0x16d   : > { %v479_v26 = vadd.f32 %v478_v24, %v398_v15  ;;  %v489_v27 = vadd.f32 %v488_v25, %v408_v16  ;;  %v480_v28 = vpop.f32.mrb[2].mxu0  ;;  %v490_v29 = vpop.f32.mrb[2].mxu1  ;;  %v572_v16 = vunpack.c.0.s8 %v571_v9 }
 0x16e   : > { %v495_v30 = vmax.f32 %v477_v22, 0.0  ;;  %v481_v31 = vadd.f32 %v480_v28, %v403_v17  ;;  %v491_v32 = vadd.f32 %v490_v29, %v413_v18  ;;  %v482_v33 = vpop.f32.mrb[3].mxu0  ;;  %v492_v34 = vpop.f32.mrb[3].mxu1  ;;  %v499_v39 = vmax.f32 %v487_v23, 0.0 }
 0x16f   : > { %v496_v36 = vmax.f32 %v479_v26, 0.0  ;;  %v483_v37 = vadd.f32 %v482_v33, %v403_v17  ;;  %v493_v38 = vadd.f32 %v492_v34, %v413_v18  ;;  %v500_v40 = vmax.f32 %v489_v27, 0.0 }
 0x170   : > { %v497_v41 = vmax.f32 %v481_v31, 0.0  ;;  %v501_v42 = vmax.f32 %v491_v32, 0.0  ;;  %v527_v45 = vmul.f32 %v510_v19, %v495_v30  ;;  %v531_v54 = vmul.f32 %v520_v49, %v499_v39 }
 0x171   : > { %v498_v43 = vmax.f32 %v483_v37, 0.0  ;;  %v502_v44 = vmax.f32 %v493_v38, 0.0  ;;  %v630_v47 = vmax.f32 %v495_v30, %v496_v36  ;;  %v636_v48 = vmax.f32 %v499_v39, %v500_v40  ;;  %v592_v30 = vld [vmem:[%s366_s9] sm:$0x3] }
 0x172   : > { %v529_v46 = vmul.f32 %v515_v35, %v497_v41  ;;  %v528_v50 = vmul.f32 %v510_v19, %v496_v36  ;;  %v532_v56 = vmul.f32 %v520_v49, %v500_v40  ;;  %v533_v59 = vmul.f32 %v525_v57, %v501_v42 }
 0x173   : > { %v530_v51 = vmul.f32 %v515_v35, %v498_v43  ;;  %v633_v52 = vmax.f32 %v497_v41, %v498_v43  ;;  %v639_v53 = vmax.f32 %v501_v42, %v502_v44  ;;  %631 = vmax.xlane.f32.xlu1 %v630_v47  ;;  %v534_v61 = vmul.f32 %v525_v57, %v502_v44 }
 0x174   : > { %v535_v55 = vadd.f32 %v529_v46, %v527_v45  ;;  %v562_v18 = vrot.slane %v557_v13, %v561_v11  ;;  %v1633_v22 = vsub.s32 %v572_v16, %v560_v4 }
 0x175   : > { %v544_v58 = vadd.f32 %v530_v51, %v528_v50  ;;  %634 = vmax.xlane.f32.xlu0 %v633_v52 }
 0x176   : > { %v536_v60 = vadd.f32 %v535_v55, %v531_v54 }
 0x177   : > { %v545_v62 = vadd.f32 %v544_v58, %v532_v56  ;;  %640 = vmax.xlane.f32.xlu1 %v639_v53 }
 0x178   : > { %v537_v0 = vadd.f32 %v536_v60, %v533_v59 }
 0x179   : > { %v546_v1 = vadd.f32 %v545_v62, %v534_v61  ;;  %637 = vmax.xlane.f32.xlu0 %v636_v48 }
 0x17a   : > { %v538_v2 = vrot.slane %v537_v0, 4 }
 0x17b   : > { %v547_v3 = vrot.slane %v546_v1, 4 }
 0x17c   : > { %v539_v5 = vadd.f32 %v538_v2, %v537_v0 }
 0x17d   : > { %v548_v6 = vadd.f32 %v547_v3, %v546_v1 }
 0x17e   : > { %v540_v7 = vrot.slane %v539_v5, 2 }
 0x17f   : > { %v549_v10 = vrot.slane %v548_v6, 2 }
 0x180   : > { %v541_v12 = vadd.f32 %v540_v7, %v539_v5 }
 0x181   : > { %v550_v14 = vadd.f32 %v549_v10, %v548_v6 }
 0x182   : > { %v542_v15 = vrot.slane %v541_v12, 1 }
 0x183   : > { %v551_v17 = vrot.slane %v550_v14, 1 }
 0x184   : > { %v543_v19 = vadd.f32 %v542_v15, %v541_v12 }
 0x185   : > { %v552_v20 = vadd.f32 %v551_v17, %v550_v14 }
 0x186   : > { %v563_v21 = vadd.f32 %v562_v18, %v543_v19 }
 0x187   : > { %v564_v23 = vadd.f32 %v562_v18, %v552_v20 }
 0x188   : > { %v929_v24 = vmul.f32 -1.442695, %v563_v21 }
 0x189   : > { %v928_v26 = vpack.c.bf16 %v564_v23, %v563_v21  ;;  %v930_v27 = vmul.f32 -1.442695, %v564_v23 }
 0x18a   : > { %1067 = vpow2.f32 %v929_v24 }
 0x18b   : > { %1069 = vpow2.f32 %v930_v27  ;;  %v576_v29 = vrot.slane %v928_v26, %v1633_v22 }
 0x18d   : > { %v583_v31 = vrot.slane %v576_v29, %v1633_v22 }
 0x18f   : > { %v593_v32 = vsel %vm591_vm7, %v583_v31, %v592_v30 }
 0x190   : > { %594 = vst [vmem:[%s366_s9] sm:$0x3] %v593_v32 }
 0x191   : > { %1202 = shalt.err (!%p1199_p8)
}
 0x192   : > { %s1203_s1 = scalar_lea.hbm %s1657_s21, 32  ;;  %s1207_s17 = scalar_lea.hbm %s1792_s5, 64 }
 0x193   : > { %p1204_p12 = scmp.ne.s32.totalorder %s1657_s21, %s1203_s1  ;;  %p1208_p7 = scmp.lt.u32.totalorder %s1657_s21, %s1792_s5 }
 0x194   : > { %p1209_p6 = scmp.lt.u32.totalorder %s1207_s17, %s1203_s1  ;;  %p1211_p11 = scmp.lt.u32.totalorder %s1203_s1, %s1657_s21 }
 0x195   : > { %p1205_p2 = pnand %p1204_p12, %p1557_p3 }
 0x196   : > { %p1210_p10 = por %p1209_p6, %p1208_p7 }
 0x197   : > { %p1206_p13 = pneg %p1205_p2 }
 0x198   : > { %p1212_p5 = por %p1211_p11, %p1210_p10 }
 0x19a   : > { %p1213_p9 = pnand %p1212_p5, %p1206_p13 }
 0x19c   : > { %1216 = shalt.err (!%p1213_p9)
}
 0x19d   : > { %963 = dma.vmem_to_hbm [thread:$0]  (%p1557_p3), %s1659_s11, 32, %s1657_s21, %s669_s15   ;;  %v1068_v33 = vpop.eup %1067 }
 0x19e   : > { %v1070_v34 = vpop.eup %1069  ;;  %v601_v35 = vadd.f32 1.0, %v1068_v33  ;;  %s673_s22 = sand.u32 1, %s1430_s8   ;;  %s373_s14 = scalar_lea.vmem [#allocation12], %s919_s10 }
 0x19f   : > { %v602_v36 = vadd.f32 1.0, %v1070_v34  ;;  %s711_s18 = sshll.u32 %s373_s14, 4  ;;  %v627_v41 = vld [vmem:[%s373_s14] sm:$0x3]  ;;  %s1698_s15 = scalar_lea.hbm %s1793_s6, %s944_s12  ;;  %s1700_s18 = int_to_ptr.vmem [resolvable:$true] %s711_s18 }
 0x1a0   : > { %1071 = vrcp.f32 %v601_v35  ;;  %s1707_s8 = scalar_lea.sflag [#allocation13], %s673_s22  ;;  %s1217_s10 = scalar_lea.vmem %s1700_s18, 32 }
 0x1a1   : > { %1073 = vrcp.f32 %v602_v36  ;;  %p1218_p0 = scmp.ne.s32.totalorder %s1700_s18, %s1217_s10  ;;  %s1352_s12 = smov [#allocation12]  }
 0x1a2   : > { %s1221_s1 = sshll.u32 %s1352_s12, 4  ;;  %s1222_s1 = int_to_ptr.vmem [resolvable:$false] %s1221_s1 }
 0x1a3   : > { %p1219_p1 = pnand %p1218_p0, %p1557_p3  ;;  %s1223_s20 = scalar_lea.vmem %s1222_s1, 64 }
 0x1a4   : > { %p1224_p8 = scmp.lt.s32.totalorder %s1700_s18, %s1222_s1  ;;  %p1225_p12 = scmp.lt.s32.totalorder %s1223_s20, %s1217_s10 }
 0x1a5   : > { %p1220_p4 = pneg %p1219_p1 }
 0x1a6   : > { %p1226_p2 = por %p1225_p12, %p1224_p8 }
 0x1a8   : > { %p1227_p13 = pnand %p1226_p2, %p1220_p4 }
 0x1aa   : > { %v1072_v37 = vpop.eup %1071 }
 0x1ab   : > { %v1074_v38 = vpop.eup %1073 }
 0x1ac   : > { %v931_v39 = vpack.c.bf16 %v1074_v38, %v1072_v37 }
 0x1ae   : > { %v618_v40 = vrot.slane %v931_v39, %v1633_v22 }
 0x1b0   : > { %v625_v42 = vrot.slane %v618_v40, %v1633_v22 }
 0x1b2   : > { %v628_v43 = vsel %vm591_vm7, %v625_v42, %v627_v41 }
 0x1b3   : > { %629 = vst [vmem:[%s373_s14] sm:$0x3] %v628_v43 }
 0x1b4   : > { %1230 = shalt.err (!%p1227_p13)
}
 0x1b5   : > { %s1231_s9 = scalar_lea.hbm %s1698_s15, 32  ;;  %s1235_s25 = scalar_lea.hbm %s1793_s6, 64 }
 0x1b6   : > { %p1232_p7 = scmp.ne.s32.totalorder %s1698_s15, %s1231_s9  ;;  %p1236_p11 = scmp.lt.u32.totalorder %s1698_s15, %s1793_s6 }
 0x1b7   : > { %p1237_p5 = scmp.lt.u32.totalorder %s1235_s25, %s1231_s9  ;;  %p1239_p0 = scmp.lt.u32.totalorder %s1231_s9, %s1698_s15 }
 0x1b8   : > { %p1233_p6 = pnand %p1232_p7, %p1557_p3 }
 0x1b9   : > { %p1238_p9 = por %p1237_p5, %p1236_p11 }
 0x1ba   : > { %p1234_p10 = pneg %p1233_p6 }
 0x1bb   : > { %p1240_p1 = por %p1239_p0, %p1238_p9 }
 0x1bd   : > { %p1241_p4 = pnand %p1240_p1, %p1234_p10 }
 0x1bf   : > { %1244 = shalt.err (!%p1241_p4)
}
 0x1c0   : > { %964 = dma.vmem_to_hbm [thread:$0]  (%p1557_p3), %s1700_s18, 32, %s1698_s15, %s1707_s8   ;;  %vm646_vm8 = vcmask 7168  }
 0x1c1   : > { %s921_s11 = sshll.u32 %s1616_s13, 5  ;;  %s946_s12 = sshll.u32 %s1331_s29, 9 }
 0x1c2   : > { %s380_s21 = scalar_lea.vmem [#allocation14], %s921_s11  ;;  %s1738_s9 = scalar_lea.hbm %s1794_s7, %s946_s12 }
 0x1c3   : > { %s724_s10 = sshll.u32 %s380_s21, 4  ;;  %s1353_s29 = smov [#allocation14]   ;;  %s1733_s10 = int_to_ptr.vmem [resolvable:$true] %s724_s10 }
 0x1c4   : > { %s1245_s13 = scalar_lea.vmem %s1733_s10, 512  ;;  %s1249_s18 = sshll.u32 %s1353_s29, 4  ;;  %s1250_s18 = int_to_ptr.vmem [resolvable:$false] %s1249_s18 }
 0x1c5   : > { %p1246_p8 = scmp.ne.s32.totalorder %s1733_s10, %s1245_s13  ;;  %s1251_s15 = scalar_lea.vmem %s1250_s18, 1024 }
 0x1c6   : > { %p1252_p13 = scmp.lt.s32.totalorder %s1733_s10, %s1250_s18  ;;  %p1253_p7 = scmp.lt.s32.totalorder %s1251_s15, %s1245_s13 }
 0x1c7   : > { %p1247_p12 = pnand %p1246_p8, %p1557_p3 }
 0x1c8   : > { %p1254_p6 = por %p1253_p7, %p1252_p13 }
 0x1c9   : > { %p1248_p2 = pneg %p1247_p12 }
 0x1cb   : > { %p1255_p10 = pnand %p1254_p6, %p1248_p2 }
 0x200   : > { %v632_v44 = vpop.xlane.xlu1 %631 }
 0x201   : > { %647 = vst.msk [vmem:[%s380_s21] sm:$0xff] %vm646_vm8, %v632_v44 }
 0x202   : > { %v635_v45 = vpop.xlane.xlu0 %634 }
 0x203   : > { %648 = vst.msk [vmem:[%s380_s21 + $0x8] sm:$0xff] %vm646_vm8, %v635_v45 }
 0x204   : > { %v641_v46 = vpop.xlane.xlu1 %640 }
 0x205   : > { %650 = vst.msk [vmem:[%s380_s21 + $0x18] sm:$0xff] %vm646_vm8, %v641_v46 }
 0x206   : > { %v638_v47 = vpop.xlane.xlu0 %637 }
 0x207   : > { %649 = vst.msk [vmem:[%s380_s21 + $0x10] sm:$0xff] %vm646_vm8, %v638_v47 }
 0x208   : > { %1258 = shalt.err (!%p1255_p10)
}
 0x209   : > { %s1259_s17 = scalar_lea.hbm %s1738_s9, 512  ;;  %s1263_s22 = scalar_lea.hbm %s1794_s7, 1024 }
 0x20a   : > { %p1260_p11 = scmp.ne.s32.totalorder %s1738_s9, %s1259_s17  ;;  %p1264_p0 = scmp.lt.u32.totalorder %s1738_s9, %s1794_s7 }
 0x20b   : > { %p1265_p1 = scmp.lt.u32.totalorder %s1263_s22, %s1259_s17  ;;  %p1267_p8 = scmp.lt.u32.totalorder %s1259_s17, %s1738_s9 }
 0x20c   : > { %p1261_p5 = pnand %p1260_p11, %p1557_p3 }
 0x20d   : > { %p1266_p4 = por %p1265_p1, %p1264_p0 }
 0x20e   : > { %p1262_p9 = pneg %p1261_p5 }
 0x20f   : > { %p1268_p12 = por %p1267_p8, %p1266_p4 }
 0x211   : > { %p1269_p2 = pnand %p1268_p12, %p1262_p9 }
 0x213   : > { %1272 = shalt.err (!%p1269_p2)
}
 0x214   : > { %s1354_s21 = smov 128   ;;  %s1355_s12 = smov 8  }
 0x215   : > { %965 = dma.vmem_to_hbm [thread:$0]  (%p1557_p3), %s1733_s10, 512, %s1738_s9, %s1707_s8, %s1354_s21, %s1354_s21, %s1355_s12  }
 0x216 PF: > { %s1822_s1 = sld [smem:[#allocation20_spill]]  ;;  %s739_s20 = sand.u32 1, %s1319_s26  }
 0x217   : > { %p1824_p7 = scmp.ge.s32.totalorder %s1339_s4, 2  ;;  %s740_s13 = scalar_lea.sflag [#allocation5], %s739_s20 }
 0x21c   : > { %p1823_p13 = scmp.ne.s32.totalorder %s1822_s1, 0 }
 0x21e   : > { %p984_p6 = pnand %p1824_p7, %p1823_p13 }
 0x220   : > { %1310 = dma.done.wait (!%p984_p6), %s740_s13, 32  }
 0x221   : > { %1312 = vsyncadd (!%p984_p6), %s740_s13, 4294967264  ;;  %s1825_s29 = sadd.s32 4294967294, %s1339_s4  }
 0x222   : > { %s748_s18 = sand.u32 1, %s1825_s29  }
 0x223   : > { %s749_s15 = scalar_lea.sflag [#allocation13], %s748_s18 }
 0x224   : > { %1314 = dma.done.wait (!%p984_p6), %s749_s15, 544  }
 0x225   : > { %1316 = vsyncadd (!%p984_p6), %s749_s15, 4294966752  ;;  %s31_s4 = sadd.s32 1, %s1339_s4   ;;  %s1826_s26 = smov %s1323_s27 }
 0x226   : > { %p28_p3 = scmp.ge.s32.totalorder %s31_s4, 4   ;;  %s1827_s27 = smov %s1327_s28 }
 0x227   : > { %s1828_s28 = smov %s1566_s24  ;;  %s1829_s29 = smov %s1335_s30 }
 0x228   : > { %s1830_s30 = smov %s1832_s23  ;;  %30 = sbr.rel (!%p28_p3) target bundleno = 13 (0xd), region = 137 }
 0x22f   :  { %763 = vsyncpa [#allocation4], 1 }
 0x230   :  { %765 = vsyncpa [#allocation4 + $0x1], 1 }
 0x231   :  { %766 = vsyncpa [#allocation7], 1 }
 0x232   :  { %767 = vsyncpa [#allocation10], 1 }
 0x233   :  { %768 = vsyncpa [#allocation5], 1 }
 0x234   :  { %770 = vsyncpa [#allocation5 + $0x1], 1 }
 0x235   :  { %771 = vsyncpa [#allocation13], 1 }
 0x236   :  { %773 = vsyncpa [#allocation13 + $0x1], 1 }

// kernel: custom-call
= control target key start
LH: loop header
LB: loop body
LE: loop exit
PB: predicated region body
PF: predicated region fallthrough
CT: control target
= control target key end

     0   :  { %s6_s0 = inlined_call_operand.vmem [shape: f32[4,16,16], index: 0, kind: output, shape index: {}]  }

// kernel: forward.3
= control target key start
LH: loop header
LB: loop body
LE: loop exit
PB: predicated region body
PF: predicated region fallthrough
CT: control target
= control target key end

     0   :  { %13 = vsyncpa [#allocation3], 0  ;;  %s1036_s0 = inlined_call_operand.vmem [shape: bf16[2,32,16], index: 0, kind: input, shape index: {}]   ;;  %s1037_s1 = inlined_call_operand.vmem [shape: bf16[16,32], index: 1, kind: input, shape index: {}]   ;;  %s1038_s2 = inlined_call_operand.vmem [shape: f32[1,32], index: 2, kind: input, shape index: {}]   ;;  %s1039_s3 = inlined_call_operand.vmem [shape: f32[32,32], index: 3, kind: input, shape index: {}]   ;;  %s1040_s4 = inlined_call_operand.vmem [shape: f32[1,16], index: 4, kind: input, shape index: {}]   ;;  %s1041_s5 = inlined_call_operand.hbm [shape: f32[2,2,32], index: 5, kind: output, shape index: {0}]   ;;  %s1042_s6 = inlined_call_operand.vmem [shape: f32[2,1,32], index: 6, kind: output, shape index: {1}]   ;;  %s1043_s7 = inlined_call_operand.vmem [shape: f32[2,2,1], index: 7, kind: output, shape index: {2}]  }
   0x1   :  { %15 = vsyncpa [#allocation3 + $0x1], 0  ;;  %s891_s24 = smov 0   ;;  %s893_s25 = smov 0  }
   0x2   :  { %s895_s26 = smov 0   ;;  %s897_s27 = smov 0  }
   0x3 LB: > { %s912_s28 = sadd.s32 4294967295, %s844_s27   ;;  %s673_s29 = sadd.s32 4294967294, %s844_s27   ;;  %s844_s27 = sphi %s897_s27, %s1049_s27   ;;  %s840_s26 = sphi %s895_s26, %s1048_s26   ;;  %s836_s25 = sphi %s893_s25, %s1047_s25   ;;  %s832_s24 = sphi %s891_s24, %s1046_s24  }
   0x4   : > { %s916_s30 = sadd.s32 1, %s844_s27   ;;  %s138_s8 = sadd.s32 1, %s840_s26 }
   0x5   : > { %s135_s9 = ssub.s32 %s844_s27, %s916_s30  ;;  %p148_p0 = scmp.ne.s32.totalorder %s840_s26, %s836_s25 }
   0x6   : > { %p136_p1 = scmp.eq.s32.totalorder %s135_s9, 0  ;;  %p149_p2 = scmp.eq.s32.totalorder %s912_s28, 1 }
   0x7   : > { %p154_p3 = scmp.ne.s32.totalorder %s836_s25, %s832_s24  ;;  %p155_p4 = scmp.eq.s32.totalorder %s673_s29, 1 }
   0x8   : > { %s927_s10 = scalar_select %p136_p1, %s840_s26, %s138_s8  }
   0x9   : > { %p929_p5 = por %p149_p2, %p148_p0  ;;  %p933_p6 = por %p155_p4, %p154_p3 }
   0xa   : > { %p676_p7 = scmp.ge.s32.totalorder %s844_s27, 1  ;;  %p245_p8 = scmp.lt.s32.totalorder %s844_s27, 3 }
   0xc   : > { %p246_p9 = pnand %p676_p7, %p245_p8 }
   0xd   : > { %v769_v0 = vld [vmem:[%s1037_s1] sm:$0xff] (!%p246_p9)   ;;  %p284_p10 = scmp.lt.s32.totalorder (!%p246_p9), %s912_s28, 1  ;;  %vm326_vm0 = vcmask (!%p246_p9), 130048   ;;  %v413_v4 = vld [vmem:[%s1039_s3 + $0x8] sm:$0xff] (!%p246_p9)  ;;  %v846_v6 = vmov (!%p246_p9), 0.0|0.0   ;;  %v414_v7 = vld [vmem:[%s1039_s3 + $0x10] sm:$0xff] (!%p246_p9) }
   0xe   : > { %249 = sbr.rel (%p246_p9) target bundleno = 817 (0x331), region = 40  ;;  %703 = vmatprep.subr.bf16.mxu0 (!%p246_p9), %v769_v0  ;;  %v412_v3 = vld [vmem:[%s1039_s3] sm:$0xff] (!%p246_p9)  ;;  %720 = vmatprep.subr.bf16.mxu1 (!%p246_p9), %v846_v6  ;;  %v415_v8 = vld [vmem:[%s1039_s3 + $0x18] sm:$0xff] (!%p246_p9)  ;;  %vm847_vm1 = vmmov (!%p246_p9), 0   ;;  %v848_v10 = vmov (!%p246_p9), 0.0   ;;  %vm386_vm2 = vcmask (!%p246_p9), 261120  }
   0xf   : > { %704 = vmatpush3.bf16.msra.mxu0 (!%p246_p9), %v769_v0  ;;  %v721_v5 = vpack.c.bf16 (!%p246_p9), %v413_v4, %v412_v3  ;;  %v724_v9 = vpack.c.bf16 (!%p246_p9), %v415_v8, %v414_v7  ;;  %717 = vmatprep.mubr.msk.f32.mxu1 (!%p246_p9), %vm847_vm1, %v848_v10  ;;  %v681_v11 = vld [vmem:[%s1038_s2] ss:$0 sm:$0xff] (!%p246_p9)  ;;  %s270_s17 = sand.u32 (!%p246_p9), 1, %s836_s25   ;;  %vm407_vm3 = vcmask (!%p246_p9), 1041409   ;;  %vm410_vm4 = vcmask (!%p246_p9), 254976   ;;  %s849_s20 = smov (!%p246_p9), 112  }
  0x10   : > { %s972_s18 = sshll.u32 (!%p246_p9), %s270_s17, 1  ;;  %v689_v51 = vld [vmem:[%s1040_s4] ss:$0 sm:$0xff] (!%p246_p9)  ;;  %vm508_vm5 = vcmask (!%p246_p9), 123904   ;;  %s691_s23 = sshll.u32 (!%p246_p9), %s912_s28, 5 }
  0x11   : > { %722 = vmatpush3.bf16.msra.mxu1 (!%p246_p9), %v721_v5  ;;  %s988_s13 = scalar_lea.hbm (!%p246_p9), %s1041_s5, %s691_s23  ;;  %s545_s14 = scalar_lea.sflag (!%p246_p9), [#allocation3], %s270_s17 }
  0x12   : > { %723 = vmatprep.subr.bf16.mxu1 (!%p246_p9), %v846_v6 }
  0x15   : > { %s944_s15 = scalar_select %p284_p10, %s912_s28, 1  ;;  %725 = vmatpush3.bf16.msra.mxu1 %v724_v9 }
  0x17   : > { %s694_s16 = sshll.u32 %s944_s15, 4 }
  0x18   : > { %s288_s19 = scalar_lea.vmem %s1036_s0, %s694_s16 }
  0x19   : > { %v770_v1 = vld [vmem:[%s288_s19] sm:$0xff]   ;;  %v771_v2 = vld [vmem:[%s288_s19 + $0x8] sm:$0xff]   ;;  %s272_s19 = scalar_lea.vmem [#allocation2], %s972_s18  ;;  %s850_s18 = smov [#allocation2]  }
  0x1a   : > { %705 = vmatprep.mubr.msk.bf16.mxu0 %vm326_vm0, %v770_v1  ;;  %s565_s29 = sshll.u32 %s272_s19, 4  ;;  %s566_s29 = int_to_ptr.vmem [resolvable:$true] %s565_s29 }
  0x1b   : > { %706 = vmatmul.mubr.msk.bf16.vlgmr.msra.gmra.mrb[0].mxu0 %vm326_vm0, %v771_v2  ;;  %s782_s16 = scalar_lea.vmem %s566_s29, 32 }
  0x1c   : > { %p783_p11 = scmp.ne.s32.totalorder %s566_s29, %s782_s16 }
  0x1e   : > { %p784_p12 = pnand %p783_p11, %p929_p5 }
  0x20   : > { %p785_p13 = pneg %p784_p12 }
  0xee   : > { %v707_v12 = vpop.f32.mrb[0].mxu0 }
  0xef   : > { %v376_v13 = vadd.f32 %v707_v12, %v681_v11  ;;  %v367_v14 = vpop.f32.mrb[1].mxu0 }
  0xf0   : > { %v368_v15 = vadd.f32 %v681_v11, %v367_v14  ;;  %v708_v16 = vpop.f32.mrb[2].mxu0 }
  0xf1   : > { %v384_v17 = vmax.f32 %v376_v13, 0.0  ;;  %v379_v18 = vadd.f32 %v708_v16, %v681_v11  ;;  %v370_v19 = vpop.f32.mrb[3].mxu0 }
  0xf2   : > { %v382_v20 = vmax.f32 %v368_v15, 0.0  ;;  %v371_v21 = vadd.f32 %v681_v11, %v370_v19 }
  0xf3   : > { %v385_v22 = vmax.f32 %v379_v18, 0.0  ;;  %v396_v24 = vsel %vm386_vm2, %v384_v17, -inf }
  0xf4   : > { %v383_v23 = vmax.f32 %v371_v21, 0.0  ;;  %v387_v26 = vsel %vm386_vm2, %v382_v20, -inf }
  0xf5   : > { %v397_v25 = vsel %vm386_vm2, %v385_v22, -inf }
  0xf6   : > { %v398_v27 = vmax.f32 %v396_v24, %v397_v25  ;;  %v388_v28 = vsel %vm386_vm2, %v383_v23, -inf }
  0xf7   : > { %v389_v29 = vmax.f32 %v387_v26, %v388_v28 }
  0xf8   : > { %v399_v30 = vrot.slane %v398_v27, 4 }
  0xf9   : > { %v390_v31 = vrot.slane %v389_v29, 4 }
  0xfa   : > { %v400_v32 = vmax.f32 %v398_v27, %v399_v30 }
  0xfb   : > { %v391_v33 = vmax.f32 %v389_v29, %v390_v31 }
  0xfc   : > { %v401_v34 = vrot.slane %v400_v32, 2 }
  0xfd   : > { %v392_v35 = vrot.slane %v391_v33, 2 }
  0xfe   : > { %v402_v36 = vmax.f32 %v400_v32, %v401_v34 }
  0xff   : > { %v393_v37 = vmax.f32 %v391_v33, %v392_v35 }
 0x100   : > { %v403_v38 = vrot.slane %v402_v36, 1 }
 0x101   : > { %v394_v39 = vrot.slane %v393_v37, 1 }
 0x102   : > { %v404_v40 = vmax.f32 %v402_v36, %v403_v38 }
 0x103   : > { %v395_v41 = vmax.f32 %v393_v37, %v394_v39 }
 0x105   : > { %v974_v42 = vsel %vm407_vm3, %v404_v40, %v395_v41 }
 0x106   : > { %718 = vmatmul.mubr.msk.f32.vlgmr.msra.gmra.mrb[0].mxu1 %vm386_vm2, %v974_v42  ;;  %411 = vst.msk [vmem:[%s272_s19] sm:$0x3] %vm410_vm4, %v974_v42 }
 0x1d9   : > { %v484_v43 = vpop.f32.mrb[0].mxu1 }
 0x1da   : > { %772 = vtanh.f32 %v484_v43  ;;  %v719_v44 = vpop.f32.mrb[1].mxu1  ;;  %v688_v46 = vmul.f32 -1.442695, %v484_v43 }
 0x1dc   : > { %774 = vpow2.f32 %v688_v46 }
 0x1e4   : > { %v773_v45 = vpop.eup %772 }
 0x1e5   : > { %496 = vrot.lane.b32.xlu0 %v773_v45, %s849_s20  ;;  %s786_s20 = sshll.u32 %s850_s18, 4  ;;  %s787_s20 = int_to_ptr.vmem [resolvable:$false] %s786_s20 }
 0x1e6   : > { %v775_v47 = vpop.eup %774  ;;  %s788_s21 = scalar_lea.vmem %s787_s20, 64  ;;  %p789_p0 = scmp.lt.s32.totalorder %s566_s29, %s787_s20 }
 0x1e7   : > { %v491_v48 = vadd.f32 1.0, %v775_v47  ;;  %p790_p1 = scmp.lt.s32.totalorder %s788_s21, %s782_s16 }
 0x1e9   : > { %776 = vrcp.f32 %v491_v48  ;;  %p791_p2 = por %p790_p1, %p789_p0 }
 0x1eb   : > { %p792_p3 = pnand %p791_p2, %p785_p13 }
 0x1f3   : > { %v777_v49 = vpop.eup %776 }
 0x257   : > { %v497_v50 = vpop.permute.xlu0 %496 }
 0x258   : > { %v499_v52 = vmul.f32 %v777_v49, %v497_v50 }
 0x25a   : > { %v507_v53 = vmul.f32 %v689_v51, %v499_v52 }
 0x25c   : > { %v509_v54 = vsel %vm508_vm5, %v507_v53, 0.0 }
 0x25d   : > { %510 = vadd.xlane.f32.xlu0 %v509_v54 }
 0x25e   : > { %795 = shalt.err (!%p792_p3)
}
 0x25f   : > { %s796_s28 = scalar_lea.hbm %s988_s13, 32  ;;  %s800_s22 = scalar_lea.hbm %s1041_s5, 64 }
 0x260   : > { %p797_p4 = scmp.ne.s32.totalorder %s988_s13, %s796_s28  ;;  %p801_p9 = scmp.lt.u32.totalorder %s988_s13, %s1041_s5 }
 0x261   : > { %p802_p10 = scmp.lt.u32.totalorder %s800_s22, %s796_s28  ;;  %p804_p12 = scmp.lt.u32.totalorder %s796_s28, %s988_s13 }
 0x262   : > { %p798_p7 = pnand %p797_p4, %p929_p5 }
 0x263   : > { %p803_p11 = por %p802_p10, %p801_p9 }
 0x264   : > { %p799_p8 = pneg %p798_p7 }
 0x265   : > { %p805_p13 = por %p804_p12, %p803_p11 }
 0x267   : > { %p806_p0 = pnand %p805_p13, %p799_p8 }
 0x269   : > { %809 = shalt.err (!%p806_p0)
}
 0x26a   : > { %726 = dma.vmem_to_hbm [thread:$0]  (%p929_p5), %s566_s29, 32, %s988_s13, %s545_s14   ;;  %vm512_vm6 = vcmask 1041408   ;;  %vm532_vm7 = vcmask 1024   ;;  %vm542_vm8 = vcmask 253952  }
 0x26b   : > { %s680_s11 = sshll.u32 %s944_s15, 1  ;;  %s291_s18 = scalar_lea.vmem %s1042_s6, %s944_s15 }
 0x26c   : > { %s295_s13 = scalar_lea.vmem %s1043_s7, %s680_s11 }
 0x2ea   : > { %v511_v55 = vpop.xlane.xlu0 %510 }
 0x2eb   : > { %v513_v56 = vsel %vm512_vm6, %v511_v55, -inf }
 0x2ec   : > { %v514_v57 = vrot.slane %v513_v56, 4 }
 0x2ee   : > { %v515_v58 = vmax.f32 %v513_v56, %v514_v57 }
 0x2f0   : > { %v516_v59 = vrot.slane %v515_v58, 2 }
 0x2f2   : > { %v517_v60 = vmax.f32 %v515_v58, %v516_v59 }
 0x2f4   : > { %v518_v61 = vrot.slane %v517_v60, 1 }
 0x2f6   : > { %v519_v62 = vmax.f32 %v517_v60, %v518_v61 }
 0x2f8   : > { %v520_v63 = vsub.f32 %v511_v55, %v519_v62 }
 0x2fa   : > { %v521_v0 = vmul.f32 1.442695, %v520_v63 }
 0x2fc   : > { %778 = vpow2.f32 %v521_v0 }
 0x306   : > { %v779_v1 = vpop.eup %778 }
 0x307   : > { %v523_v2 = vsel %vm512_vm6, %v779_v1, 0.0 }
 0x308   : > { %v524_v3 = vrot.slane %v523_v2, 4 }
 0x30a   : > { %v525_v4 = vadd.f32 %v524_v3, %v523_v2 }
 0x30c   : > { %v526_v5 = vrot.slane %v525_v4, 2 }
 0x30e   : > { %v527_v6 = vadd.f32 %v526_v5, %v525_v4 }
 0x310   : > { %v528_v7 = vrot.slane %v527_v6, 1 }
 0x312   : > { %v529_v8 = vadd.f32 %v528_v7, %v527_v6 }
 0x314   : > { %780 = vrcp.f32 %v529_v8 }
 0x31e   : > { %v781_v9 = vpop.eup %780 }
 0x31f   : > { %v531_v10 = vmul.f32 %v781_v9, %v779_v1 }
 0x321   : > { %533 = vst.msk [vmem:[%s295_s13] sm:$0x3] %vm532_vm7, %v531_v10  ;;  %v534_v11 = vmul.f32 %v531_v10, %v974_v42 }
 0x323   : > { %v535_v12 = vsel %vm410_vm4, %v534_v11, 0.0 }
 0x324   : > { %v536_v13 = vrot.slane %v535_v12, 4 }
 0x326   : > { %v537_v14 = vadd.f32 %v536_v13, %v535_v12 }
 0x328   : > { %v538_v15 = vrot.slane %v537_v14, 2 }
 0x32a   : > { %v539_v16 = vadd.f32 %v538_v15, %v537_v14 }
 0x32c   : > { %v540_v17 = vrot.slane %v539_v16, 1 }
 0x32e   : > { %v541_v18 = vadd.f32 %v540_v17, %v539_v16 }
 0x330   : > { %543 = vst.msk [vmem:[%s291_s18] sm:$0x1] %vm542_vm8, %v541_v18 }
 0x331 PF: > { %p732_p5 = scmp.ge.s32.totalorder %s844_s27, 2  ;;  %s583_s20 = sand.u32 1, %s832_s24  }
 0x332   : > { %s584_s21 = scalar_lea.sflag [#allocation3], %s583_s20 }
 0x333   : > { %p729_p1 = pnand %p732_p5, %p933_p6 }
 0x335   : > { %827 = dma.done.wait (!%p729_p1), %s584_s21, 32  }
 0x336   : > { %829 = vsyncadd (!%p729_p1), %s584_s21, 4294967264  ;;  %p18_p2 = scmp.ge.s32.totalorder %s916_s30, 4   ;;  %s1046_s24 = smov %s836_s25 }
 0x337   : > { %s1047_s25 = smov %s840_s26  ;;  %s1048_s26 = smov %s927_s10 }
 0x338   : > { %s1049_s27 = smov %s916_s30  ;;  %20 = sbr.rel (!%p18_p2) target bundleno = 3 (0x3), region = 99 }
 0x33f   :  { %602 = vsyncpa [#allocation3], 1 }
 0x340   :  { %604 = vsyncpa [#allocation3 + $0x1], 1 }

</bundles_post_ra>
